<compile_context>
chip_gen: v6e
topology: v6e:2x2x1
jax: 0.10.0
libtpu: 0.0.40
codegen_flags: <defaults>
</compile_context>

<pallas_src>
import functools

import jax
import jax.numpy as jnp
from jax.experimental import pallas as pl
from jax.experimental.pallas import tpu as pltpu


def _weighted_ce_kernel(pred_ref, side_ref, sum_out_ref, cnt_out_ref,
                        sum_acc, cnt_acc, *, n_rows, use_mxu_rowsum):
    c = pl.program_id(0)               # chunk  (parallel across TensorCores)
    t = pl.program_id(1)               # tile within chunk (sequential reduction)
    nt = pl.num_programs(1)

    @pl.when(t == 0)
    def _():
        sum_acc[...] = jnp.zeros_like(sum_acc)
        cnt_acc[...] = jnp.zeros_like(cnt_acc)

    pred = pred_ref[...].astype(jnp.float32)          # (TN, C), f32 math
    label = side_ref[:, 0:1].astype(jnp.int32)        # (TN, 1)
    weight = side_ref[:, 1:2]                         # (TN, 1) f32
    tn, nc = pred.shape

    # Rows past N (partial trailing tile / clamped duplicate tile) are masked so
    # unspecified DMA-pad data cannot reach the accumulators.
    row = jax.lax.broadcasted_iota(jnp.int32, (tn, 1), 0)
    global_row = (c * nt + t) * tn + row
    valid = global_row < n_rows
    valid_w = jnp.where(valid, weight, 0.0)           # fused validity+weight mask

    # Stable per-row log-softmax cross entropy: logsumexp(pred) - pred[label].
    m = jnp.max(pred, axis=-1, keepdims=True)
    p_exp = jnp.exp(pred - m)
    col = jax.lax.broadcasted_iota(jnp.int32, pred.shape, 1)
    sel = jnp.where(col == label, pred, 0.0)
    if use_mxu_rowsum:
        # Class-axis row sums on the (otherwise idle) MXU.  Only enable after a
        # bundle dump shows the XLU is the saturating slot (large C); HIGHEST
        # precision keeps f32-equivalent numerics.
        ones_col = jnp.ones((nc, 1), jnp.float32)
        sum_exp = jnp.dot(p_exp, ones_col, preferred_element_type=jnp.float32,
                          precision=jax.lax.Precision.HIGHEST)
        picked = jnp.dot(sel, ones_col, preferred_element_type=jnp.float32,
                         precision=jax.lax.Precision.HIGHEST)
    else:
        sum_exp = jnp.sum(p_exp, axis=-1, keepdims=True)
        picked = jnp.sum(sel, axis=-1, keepdims=True)
    lse = m + jnp.log(sum_exp)
    # Sanitize: padded rows may hold garbage bits (inf/NaN patterns); the (TN,1)
    # where keeps them out of the accumulators without touching the (TN,C) data.
    raw = jnp.where(valid, lse - picked, 0.0)         # (TN, 1)

    # Vector accumulators (per-row); the cross-sublane reduction to a scalar
    # happens only once, in the final step.
    sum_acc[...] += raw * valid_w
    cnt_acc[...] += (valid_w > 0).astype(jnp.float32)

    @pl.when(t == nt - 1)
    def _():
        sum_out_ref[...] = jnp.sum(sum_acc[...], keepdims=True)   # (1, 1)
        cnt_out_ref[...] = jnp.sum(cnt_acc[...], keepdims=True)   # (1, 1)


def _lane_pad(c):
    return ((c + 127) // 128) * 128


def _vmem_capacity_bytes():
    # Per-generation VMEM: v5e/v6e 128 MiB, v7x 64 MiB per TC.  Fallback is the
    # smallest (v7x-safe) value so a failed query can never cause VMEM OOM.
    try:
        return int(pltpu.get_tpu_info().vmem_capacity_bytes)
    except Exception:
        return 64 * 1024 * 1024


def _default_num_chunks():
    # The "parallel" chunk axis only pays off on megacore parts (2 TensorCores
    # sharing a grid); on single-TC chips (v5e/v6e) it is pure overhead.
    try:
        kind = jax.devices()[0].device_kind.lower()
    except Exception:
        return 1
    return 2 if any(tag in kind for tag in ("v4", "v5p", "7")) else 1


def cross_entropy_loss(cls_score, label, label_weight, *, loss_weight=1.0,
                       tile_n=None, num_chunks=None, vmem_budget_bytes=None,
                       use_mxu_rowsum=False):
    """Pallas CrossEntropyLoss(use_sigmoid=False, use_mask=False) forward."""
    N, C = cls_score.shape
    itemsize = jnp.dtype(cls_score.dtype).itemsize
    sublane = 16 if itemsize < 4 else 8          # bf16 packs 2 rows per sublane

    # Per-generation VMEM-driven sizing:
    #   scoped limit ~= 0.75 * physical (96 MiB on v5e/v6e, 48 MiB on v7x),
    #   live-tile budget ~= half of that (per_row below already counts the
    #   double-buffered pipeline copies, so usage stays well under the limit).
    vmem_cap = _vmem_capacity_bytes()
    vmem_limit_cap = max(32 * 1024 * 1024, int(0.75 * vmem_cap))
    if vmem_budget_bytes is None:
        vmem_budget_bytes = vmem_limit_cap // 2

    # Per-row VMEM cost under padded (8,128)/(16,128) layout:
    #   pred (2 pipeline buffers) + packed label/weight stream (2 buffers)
    #   + two (tile_n, 1) f32 accumulators (each row lane-pads to 512 B).
    per_row = 2 * _lane_pad(C) * itemsize + 2 * 128 * 4 + 2 * 128 * 4
    # TODO(synk): lane-pack k = 128 // lane_pad(C) rows per vreg row for small C
    # (and store side/accumulators lane-dense) to cut the 128-lane padding waste.

    if tile_n is None:
        # No artificial row cap: take the biggest tile the budget allows so each
        # grid step moves as much real data as possible (amortizes ~0.35 us/step).
        tile_n = max(sublane, int(vmem_budget_bytes // per_row))
    cap = max(sublane, (N // sublane) * sublane)        # never oversize vs. N
    tile_n = max(sublane, min((tile_n // sublane) * sublane, cap))

    total_tiles = pl.cdiv(N, tile_n)
    if num_chunks is None:
        num_chunks = _default_num_chunks()
    num_chunks = max(1, min(num_chunks, total_tiles))
    tiles_per_chunk = pl.cdiv(total_tiles, num_chunks)
    last_tile = total_tiles - 1

    # Pack labels + weights into one f32 side stream (class index exact < 2**24):
    # a single small DMA per tile instead of two.
    side = jnp.concatenate(
        [label.reshape(N, 1).astype(jnp.float32),
         label_weight.reshape(N, 1).astype(jnp.float32)], axis=1)     # (N, 2)

    def _tile_index(c, t):
        g = c * tiles_per_chunk + t
        # Tiles that fall entirely past N (uneven chunk split) are clamped; their
        # rows are rejected by the in-kernel global-row bound check.
        return (jnp.minimum(g, last_tile), 0)

    vmem_limit = min(vmem_limit_cap,
                     max(32 * 1024 * 1024, int(2 * per_row * tile_n)))

    # TODO(synk): for vocab-scale C, add a class-axis grid dim with an online
    # logsumexp instead of requiring full-C rows per block.
    partial_sum, partial_cnt = pl.pallas_call(
        functools.partial(_weighted_ce_kernel, n_rows=N,
                          use_mxu_rowsum=use_mxu_rowsum),
        out_shape=(jax.ShapeDtypeStruct((num_chunks, 1), jnp.float32),
                   jax.ShapeDtypeStruct((num_chunks, 1), jnp.float32)),
        grid_spec=pltpu.PrefetchScalarGridSpec(
            num_scalar_prefetch=0,
            grid=(num_chunks, tiles_per_chunk),
            in_specs=[
                pl.BlockSpec((tile_n, C), _tile_index),      # logits stream
                pl.BlockSpec((tile_n, 2), _tile_index),      # packed label/weight
            ],
            out_specs=[
                pl.BlockSpec((1, 1), lambda c, t: (c, 0)),   # per-chunk loss sum
                pl.BlockSpec((1, 1), lambda c, t: (c, 0)),   # per-chunk count(w>0)
            ],
            scratch_shapes=[pltpu.VMEM((tile_n, 1), jnp.float32),
                            pltpu.VMEM((tile_n, 1), jnp.float32)],
        ),
        compiler_params=pltpu.CompilerParams(
            dimension_semantics=("parallel", "arbitrary"),
            vmem_limit_bytes=vmem_limit),
    )(cls_score, side)

    total_sum = jnp.sum(partial_sum)
    avg_factor = jnp.maximum(jnp.sum(partial_cnt), 1.0)
    return (loss_weight * total_sum / avg_factor).reshape(1)


def _reference(cls_score, label, label_weight, loss_weight=1.0):
    # pure-JAX reference of mmdet's weighted_cross_entropy (reduce=True)
    logp = jax.nn.log_softmax(cls_score.astype(jnp.float32), axis=-1)
    raw = -jnp.take_along_axis(logp, label[:, None].astype(jnp.int32), axis=-1)[:, 0]
    w = label_weight.astype(jnp.float32)
    avg_factor = jnp.maximum(jnp.sum(w > 0).astype(jnp.float32), 1.0)
    return (loss_weight * jnp.sum(raw * w) / avg_factor)[None]


# TODO(synk): use_sigmoid / use_mask criterion branches are not exercised by the
# default __init__ (use_sigmoid=False, use_mask=False) and are not implemented.

if __name__ == "__main__":
    key = jax.random.PRNGKey(0)
    k1, k2, k3 = jax.random.split(key, 3)

    N, C = 200, 8                       # small shapes; N not a multiple of tiles
    cls_score = jax.random.normal(k1, (N, C), dtype=jnp.float32)
    label = jax.random.randint(k2, (N,), 0, C, dtype=jnp.int32)
    # some samples ignored (weight 0), rest weight 1 — exercises avg_factor
    label_weight = jax.random.bernoulli(k3, 0.8, (N,)).astype(jnp.float32)

    ref = _reference(cls_score, label, label_weight, loss_weight=1.0)

    # 1) default auto-sized tile (single big tile; num_chunks auto per chip)
    loss = cross_entropy_loss(cls_score, label, label_weight, loss_weight=1.0)
    loss = jax.block_until_ready(loss)
    assert loss.shape == (1,)
    assert jnp.allclose(loss, ref, rtol=1e-5, atol=1e-5), (loss, ref)

    # 2) multi-tile + 2-chunk parallel split + partial trailing-tile masking
    loss2 = cross_entropy_loss(cls_score, label, label_weight, loss_weight=1.0,
                               tile_n=64, num_chunks=2)
    loss2 = jax.block_until_ready(loss2)
    assert jnp.allclose(loss2, ref, rtol=1e-5, atol=1e-5), (loss2, ref)

    # 3) bf16 logits (halves the dominant HBM stream); math stays f32 in-kernel
    cls_bf16 = cls_score.astype(jnp.bfloat16)
    ref_bf16 = _reference(cls_bf16, label, label_weight, loss_weight=1.0)
    loss3 = cross_entropy_loss(cls_bf16, label, label_weight, loss_weight=1.0)
    loss3 = jax.block_until_ready(loss3)
    assert jnp.allclose(loss3, ref_bf16, rtol=1e-5, atol=1e-5), (loss3, ref_bf16)

    print("KERNEL_OK")
</pallas_src>

<mosaic_0001>
module attributes {stable_mosaic.version = 11 : i64} {
  func.func @_weighted_ce_kernel(%arg0: i32, %arg1: i32, %arg2: memref<200x8xf32, #tpu.memory_space<vmem>>, %arg3: memref<200x2xf32, #tpu.memory_space<vmem>>, %arg4: memref<1x1xf32, #tpu.memory_space<vmem>>, %arg5: memref<1x1xf32, #tpu.memory_space<vmem>>, %arg6: memref<200x1xf32, #tpu.memory_space<vmem>>, %arg7: memref<200x1xf32, #tpu.memory_space<vmem>>) attributes {dimension_semantics = [#tpu.dimension_semantics<parallel>, #tpu.dimension_semantics<arbitrary>], iteration_bounds = array<i64: 1, 1>, scalar_prefetch = 0 : i64, scratch_operands = 2 : i64, tpu.core_type = #tpu.core_type<tc>, window_params = [{transform_indices = @transform_0, window_bounds = array<i64: 200, 8>}, {transform_indices = @transform_1, window_bounds = array<i64: 200, 2>}, {transform_indices = @transform_2, window_bounds = array<i64: 1, 1>}, {transform_indices = @transform_3, window_bounds = array<i64: 1, 1>}]} {
    %c0_i32 = arith.constant 0 : i32
    %0 = arith.cmpi eq, %arg1, %c0_i32 : i32
    %1 = arith.extui %0 : i1 to i32
    %c0_i32_0 = arith.constant 0 : i32
    %2 = arith.cmpi ne, %1, %c0_i32_0 : i32
    scf.if %2 {
      %cst_22 = arith.constant 0.000000e+00 : f32
      %50 = vector.broadcast %cst_22 : f32 to vector<200x1xf32>
      %c0_23 = arith.constant 0 : index
      %c0_24 = arith.constant 0 : index
      %51 = vector.load %arg6[%c0_23, %c0_24] : memref<200x1xf32, #tpu.memory_space<vmem>>, vector<200x1xf32>
      tpu.vector_store %arg6[%c0_23, %c0_24], %50 {strides = array<i32>} : memref<200x1xf32, #tpu.memory_space<vmem>>, vector<200x1xf32>,
      %cst_25 = arith.constant 0.000000e+00 : f32
      %52 = vector.broadcast %cst_25 : f32 to vector<200x1xf32>
      %c0_26 = arith.constant 0 : index
      %c0_27 = arith.constant 0 : index
      %53 = vector.load %arg7[%c0_26, %c0_27] : memref<200x1xf32, #tpu.memory_space<vmem>>, vector<200x1xf32>
      tpu.vector_store %arg7[%c0_26, %c0_27], %52 {strides = array<i32>} : memref<200x1xf32, #tpu.memory_space<vmem>>, vector<200x1xf32>,
    } else {
    }
    %c0 = arith.constant 0 : index
    %c0_1 = arith.constant 0 : index
    %3 = vector.load %arg2[%c0, %c0_1] : memref<200x8xf32, #tpu.memory_space<vmem>>, vector<200x8xf32>
    %c0_2 = arith.constant 0 : index
    %c0_3 = arith.constant 0 : index
    %4 = vector.load %arg3[%c0_2, %c0_3] : memref<200x2xf32, #tpu.memory_space<vmem>>, vector<200x1xf32>
    %5 = arith.fptosi %4 : vector<200x1xf32> to vector<200x1xi32>
    %c0_4 = arith.constant 0 : index
    %c1 = arith.constant 1 : index
    %6 = vector.load %arg3[%c0_4, %c1] : memref<200x2xf32, #tpu.memory_space<vmem>>, vector<200x1xf32>
    %7 = tpu.iota {dimensions = array<i32: 0>} : vector<200x1xi32>
    %c1_i32 = arith.constant 1 : i32
    %8 = arith.muli %arg0, %c1_i32 : i32
    %9 = arith.addi %8, %arg1 : i32
    %c200_i32 = arith.constant 200 : i32
    %10 = arith.muli %9, %c200_i32 : i32
    %11 = vector.broadcast %10 : i32 to vector<200x1xi32>
    %12 = arith.addi %11, %7 : vector<200x1xi32>
    %c200_i32_5 = arith.constant 200 : i32
    %13 = vector.broadcast %c200_i32_5 : i32 to vector<200x1xi32>
    %14 = arith.cmpi slt, %12, %13 : vector<200x1xi32>
    %cst = arith.constant 0.000000e+00 : f32
    %15 = vector.broadcast %cst : f32 to vector<200x1xf32>
    %16 = arith.select %14, %6, %15 : vector<200x1xi1>, vector<200x1xf32>
    %cst_6 = arith.constant dense<0xFF800000> : vector<200xf32>
    %17 = vector.multi_reduction <maximumf>, %3, %cst_6 [1] : vector<200x8xf32> to vector<200xf32>
    %18 = vector.shape_cast %17 : vector<200xf32> to vector<200x1xf32>
    %19 = vector.broadcast %18 : vector<200x1xf32> to vector<200x8xf32>
    %20 = arith.subf %3, %19 : vector<200x8xf32>
    %21 = math.exp %20 : vector<200x8xf32>
    %22 = tpu.iota {dimensions = array<i32: 1>} : vector<200x8xi32>
    %23 = vector.broadcast %5 : vector<200x1xi32> to vector<200x8xi32>
    %24 = arith.cmpi eq, %22, %23 : vector<200x8xi32>
    %cst_7 = arith.constant 0.000000e+00 : f32
    %25 = vector.broadcast %cst_7 : f32 to vector<200x8xf32>
    %26 = arith.select %24, %3, %25 : vector<200x8xi1>, vector<200x8xf32>
    %cst_8 = arith.constant dense<0.000000e+00> : vector<200xf32>
    %27 = vector.multi_reduction <add>, %21, %cst_8 [1] : vector<200x8xf32> to vector<200xf32>
    %28 = vector.shape_cast %27 : vector<200xf32> to vector<200x1xf32>
    %cst_9 = arith.constant dense<0.000000e+00> : vector<200xf32>
    %29 = vector.multi_reduction <add>, %26, %cst_9 [1] : vector<200x8xf32> to vector<200xf32>
    %30 = vector.shape_cast %29 : vector<200xf32> to vector<200x1xf32>
    %31 = math.log %28 : vector<200x1xf32>
    %32 = arith.addf %18, %31 : vector<200x1xf32>
    %33 = arith.subf %32, %30 : vector<200x1xf32>
    %cst_10 = arith.constant 0.000000e+00 : f32
    %34 = vector.broadcast %cst_10 : f32 to vector<200x1xf32>
    %35 = arith.select %14, %33, %34 : vector<200x1xi1>, vector<200x1xf32>
    %c0_11 = arith.constant 0 : index
    %c0_12 = arith.constant 0 : index
    %36 = vector.load %arg6[%c0_11, %c0_12] : memref<200x1xf32, #tpu.memory_space<vmem>>, vector<200x1xf32>
    %37 = arith.mulf %35, %16 : vector<200x1xf32>
    %38 = arith.addf %36, %37 : vector<200x1xf32>
    %c0_13 = arith.constant 0 : index
    %c0_14 = arith.constant 0 : index
    %39 = vector.load %arg6[%c0_13, %c0_14] : memref<200x1xf32, #tpu.memory_space<vmem>>, vector<200x1xf32>
    tpu.vector_store %arg6[%c0_13, %c0_14], %38 {strides = array<i32>} : memref<200x1xf32, #tpu.memory_space<vmem>>, vector<200x1xf32>,
    %c0_15 = arith.constant 0 : index
    %c0_16 = arith.constant 0 : index
    %40 = vector.load %arg7[%c0_15, %c0_16] : memref<200x1xf32, #tpu.memory_space<vmem>>, vector<200x1xf32>
    %cst_17 = arith.constant 0.000000e+00 : f32
    %41 = vector.broadcast %cst_17 : f32 to vector<200x1xf32>
    %42 = arith.cmpf ogt, %16, %41 : vector<200x1xf32>
    %43 = arith.extui %42 : vector<200x1xi1> to vector<200x1xi32>
    %44 = arith.sitofp %43 : vector<200x1xi32> to vector<200x1xf32>
    %45 = arith.addf %40, %44 : vector<200x1xf32>
    %c0_18 = arith.constant 0 : index
    %c0_19 = arith.constant 0 : index
    %46 = vector.load %arg7[%c0_18, %c0_19] : memref<200x1xf32, #tpu.memory_space<vmem>>, vector<200x1xf32>
    tpu.vector_store %arg7[%c0_18, %c0_19], %45 {strides = array<i32>} : memref<200x1xf32, #tpu.memory_space<vmem>>, vector<200x1xf32>,
    %c0_i32_20 = arith.constant 0 : i32
    %47 = arith.cmpi eq, %arg1, %c0_i32_20 : i32
    %48 = arith.extui %47 : i1 to i32
    %c0_i32_21 = arith.constant 0 : i32
    %49 = arith.cmpi ne, %48, %c0_i32_21 : i32
    scf.if %49 {
      %c0_22 = arith.constant 0 : index
      %c0_23 = arith.constant 0 : index
      %50 = vector.load %arg6[%c0_22, %c0_23] : memref<200x1xf32, #tpu.memory_space<vmem>>, vector<200x1xf32>
      %51 = vector.shape_cast %50 : vector<200x1xf32> to vector<1x200x1xf32>
      %cst_24 = arith.constant dense<0.000000e+00> : vector<1xf32>
      %52 = vector.multi_reduction <add>, %51, %cst_24 [1, 2] : vector<1x200x1xf32> to vector<1xf32>
      %53 = vector.shape_cast %52 : vector<1xf32> to vector<1x1x1xf32>
      %54 = vector.extract %53[0, 0, 0] : f32 from vector<1x1x1xf32>
      %55 = vector.broadcast %54 : f32 to vector<1x1xf32>
      %c0_25 = arith.constant 0 : index
      %c0_26 = arith.constant 0 : index
      %56 = vector.load %arg4[%c0_25, %c0_26] : memref<1x1xf32, #tpu.memory_space<vmem>>, vector<1x1xf32>
      tpu.vector_store %arg4[%c0_25, %c0_26], %55 {strides = array<i32>} : memref<1x1xf32, #tpu.memory_space<vmem>>, vector<1x1xf32>,
      %c0_27 = arith.constant 0 : index
      %c0_28 = arith.constant 0 : index
      %57 = vector.load %arg7[%c0_27, %c0_28] : memref<200x1xf32, #tpu.memory_space<vmem>>, vector<200x1xf32>
      %58 = vector.shape_cast %57 : vector<200x1xf32> to vector<1x200x1xf32>
      %cst_29 = arith.constant dense<0.000000e+00> : vector<1xf32>
      %59 = vector.multi_reduction <add>, %58, %cst_29 [1, 2] : vector<1x200x1xf32> to vector<1xf32>
      %60 = vector.shape_cast %59 : vector<1xf32> to vector<1x1x1xf32>
      %61 = vector.extract %60[0, 0, 0] : f32 from vector<1x1x1xf32>
      %62 = vector.broadcast %61 : f32 to vector<1x1xf32>
      %c0_30 = arith.constant 0 : index
      %c0_31 = arith.constant 0 : index
      %63 = vector.load %arg5[%c0_30, %c0_31] : memref<1x1xf32, #tpu.memory_space<vmem>>, vector<1x1xf32>
      tpu.vector_store %arg5[%c0_30, %c0_31], %62 {strides = array<i32>} : memref<1x1xf32, #tpu.memory_space<vmem>>, vector<1x1xf32>,
    } else {
    }
    return
  }
  func.func @transform_0(%arg0: i32, %arg1: i32) -> (i32, i32) {
    %c1_i32 = arith.constant 1 : i32
    %0 = arith.muli %arg0, %c1_i32 : i32
    %1 = arith.addi %0, %arg1 : i32
    %c0_i32 = arith.constant 0 : i32
    %2 = arith.minsi %1, %c0_i32 : i32
    %c0_i32_0 = arith.constant 0 : i32
    %c0_i32_1 = arith.constant 0 : i32
    return %2, %c0_i32_0 : i32, i32
  }
  func.func @transform_1(%arg0: i32, %arg1: i32) -> (i32, i32) {
    %c1_i32 = arith.constant 1 : i32
    %0 = arith.muli %arg0, %c1_i32 : i32
    %1 = arith.addi %0, %arg1 : i32
    %c0_i32 = arith.constant 0 : i32
    %2 = arith.minsi %1, %c0_i32 : i32
    %c0_i32_0 = arith.constant 0 : i32
    %c0_i32_1 = arith.constant 0 : i32
    return %2, %c0_i32_0 : i32, i32
  }
  func.func @transform_2(%arg0: i32, %arg1: i32) -> (i32, i32) {
    %c0_i32 = arith.constant 0 : i32
    %c0_i32_0 = arith.constant 0 : i32
    return %arg0, %c0_i32 : i32, i32
  }
  func.func @transform_3(%arg0: i32, %arg1: i32) -> (i32, i32) {
    %c0_i32 = arith.constant 0 : i32
    %c0_i32_0 = arith.constant 0 : i32
    return %arg0, %c0_i32 : i32, i32
  }
}

</mosaic_0001>

<bundles_post_ra>
// kernel: tpu_custom_call.1
= control target key start
LH: loop header
LB: loop body
LE: loop exit
PB: predicated region body
PF: predicated region fallthrough
CT: control target
= control target key end

     0   :  { %9 = vsyncpa [#allocation5], 0  ;;  %vm313_vm0 = vcmask 64512   ;;  %v1868_v6 = vmov 0   ;;  %s2755_s0 = inlined_call_operand.vmem [shape: f32[200,8], index: 0, kind: input, shape index: {}]   ;;  %s2756_s1 = inlined_call_operand.vmem [shape: f32[200,2], index: 1, kind: input, shape index: {}]   ;;  %s2757_s2 = inlined_call_operand.hbm [shape: f32[1,1], index: 2, kind: output, shape index: {0}]   ;;  %s2758_s3 = inlined_call_operand.hbm [shape: f32[1,1], index: 3, kind: output, shape index: {1}]  }
   0x1   :  { %v1896_v0 = vld [vmem:[%s2755_s0 + $0x10] sm:$0xff]  ;;  %v1901_v1 = vld [vmem:[%s2755_s0] sm:$0xff]  ;;  %v1906_v2 = vld [vmem:[%s2755_s0 + $0x18] sm:$0xff]  ;;  %1616 = vset.pattern.permute.xlu1 %v1868_v6  ;;  %1615 = vset.pattern.permute.xlu0 %v1868_v6 }
   0x2   :  { %v320_v3 = vsel %vm313_vm0, %v1896_v0, -inf  ;;  %v314_v4 = vsel %vm313_vm0, %v1901_v1, -inf  ;;  %v1915_v5 = vld [vmem:[%s2755_s0 + $0x8] sm:$0xff]  ;;  %v323_v7 = vsel %vm313_vm0, %v1906_v2, -inf  ;;  %v1929_v10 = vld [vmem:[%s2755_s0 + $0x20] sm:$0xff]  ;;  %v1938_v13 = vld [vmem:[%s2755_s0 + $0x38] sm:$0xff] }
   0x3   :  { %321 = vmax.xlane.f32.xlu1 %v320_v3  ;;  %315 = vmax.xlane.f32.xlu0 %v314_v4  ;;  %v317_v8 = vsel %vm313_vm0, %v1915_v5, -inf  ;;  %v1924_v9 = vld [vmem:[%s2755_s0 + $0x28] sm:$0xff]  ;;  %v326_v12 = vsel %vm313_vm0, %v1929_v10, -inf  ;;  %v1943_v14 = vld [vmem:[%s2755_s0 + $0x30] sm:$0xff]  ;;  %v335_v15 = vsel %vm313_vm0, %v1938_v13, -inf  ;;  %v1957_v18 = vld [vmem:[%s2755_s0 + $0x40] sm:$0xff] }
   0x4   :  { %v329_v11 = vsel %vm313_vm0, %v1924_v9, -inf  ;;  %v332_v16 = vsel %vm313_vm0, %v1943_v14, -inf  ;;  %v1952_v17 = vld [vmem:[%s2755_s0 + $0x48] sm:$0xff]  ;;  %v338_v20 = vsel %vm313_vm0, %v1957_v18, -inf  ;;  %v1966_v21 = vld [vmem:[%s2755_s0 + $0x58] sm:$0xff]  ;;  %v1971_v22 = vld [vmem:[%s2755_s0 + $0x50] sm:$0xff] }
   0x5   :  { %v341_v19 = vsel %vm313_vm0, %v1952_v17, -inf }
   0x7   :  { %324 = vmax.xlane.f32.xlu1 %v323_v7  ;;  %318 = vmax.xlane.f32.xlu0 %v317_v8 }
   0xb   :  { %330 = vmax.xlane.f32.xlu1 %v329_v11  ;;  %327 = vmax.xlane.f32.xlu0 %v326_v12 }
   0xf   :  { %336 = vmax.xlane.f32.xlu1 %v335_v15  ;;  %333 = vmax.xlane.f32.xlu0 %v332_v16 }
  0x10   :  { %10 = vsyncpa [#allocation7], 0  ;;  %v347_v23 = vsel %vm313_vm0, %v1966_v21, -inf  ;;  %v344_v24 = vsel %vm313_vm0, %v1971_v22, -inf  ;;  %v1980_v25 = vld [vmem:[%s2755_s0 + $0x68] sm:$0xff]  ;;  %v1985_v26 = vld [vmem:[%s2755_s0 + $0x60] sm:$0xff] }
  0x11   :  { %v353_v27 = vsel %vm313_vm0, %v1980_v25, -inf  ;;  %v350_v28 = vsel %vm313_vm0, %v1985_v26, -inf  ;;  %v1994_v29 = vld [vmem:[%s2755_s0 + $0x78] sm:$0xff]  ;;  %v1999_v30 = vld [vmem:[%s2755_s0 + $0x70] sm:$0xff]  ;;  %v2008_v33 = vld [vmem:[%s2755_s0 + $0x88] sm:$0xff]  ;;  %s1870_s29 = smov 127  }
  0x12   :  { %v359_v31 = vsel %vm313_vm0, %v1994_v29, -inf  ;;  %v356_v32 = vsel %vm313_vm0, %v1999_v30, -inf  ;;  %v2013_v34 = vld [vmem:[%s2755_s0 + $0x80] sm:$0xff]  ;;  %v365_v35 = vsel %vm313_vm0, %v2008_v33, -inf  ;;  %v2022_v37 = vld [vmem:[%s2755_s0 + $0x98] sm:$0xff]  ;;  %v2027_v38 = vld [vmem:[%s2755_s0 + $0x90] sm:$0xff] }
  0x13   :  { %342 = vmax.xlane.f32.xlu1 %v341_v19  ;;  %339 = vmax.xlane.f32.xlu0 %v338_v20  ;;  %v362_v36 = vsel %vm313_vm0, %v2013_v34, -inf  ;;  %v371_v39 = vsel %vm313_vm0, %v2022_v37, -inf  ;;  %v368_v40 = vsel %vm313_vm0, %v2027_v38, -inf  ;;  %v2036_v41 = vld [vmem:[%s2755_s0 + $0xa8] sm:$0xff]  ;;  %v2041_v42 = vld [vmem:[%s2755_s0 + $0xa0] sm:$0xff]  ;;  %v2050_v45 = vld [vmem:[%s2755_s0 + $0xb0] sm:$0xff] }
  0x14   :  { %v377_v43 = vsel %vm313_vm0, %v2036_v41, -inf  ;;  %v374_v44 = vsel %vm313_vm0, %v2041_v42, -inf  ;;  %v2055_v46 = vld [vmem:[%s2755_s0 + $0xb8] sm:$0xff]  ;;  %v380_v47 = vsel %vm313_vm0, %v2050_v45, -inf  ;;  %v2064_v49 = vld [vmem:[%s2755_s0 + $0xc0] sm:$0xff]  ;;  %v2071_v51 = vld [vmem:[%s2756_s1 + $0x8] sm:$0xff] }
  0x15   :  { %v383_v48 = vsel %vm313_vm0, %v2055_v46, -inf  ;;  %v386_v50 = vsel %vm313_vm0, %v2064_v49, -inf  ;;  %v2076_v52 = vld [vmem:[%s2756_s1] sm:$0xff]  ;;  %v1558_v53 = vtrunc.f32 %v2071_v51  ;;  %v2083_v55 = vld [vmem:[%s2756_s1 + $0x18] sm:$0xff]  ;;  %v2088_v56 = vld [vmem:[%s2756_s1 + $0x10] sm:$0xff]  ;;  %s1872_s21 = smov [#allocation6]  }
  0x16   :  { %v1556_v54 = vtrunc.f32 %v2076_v52  ;;  %v1562_v58 = vtrunc.f32 %v2083_v55  ;;  %v1560_v60 = vtrunc.f32 %v2088_v56  ;;  %v166_v61 = vld [vmem:[%s2756_s1 + $0x38] sm:$0xff]  ;;  %v2098_v62 = vld [vmem:[%s2756_s1 + $0x20] sm:$0xff]  ;;  %v2107_v8 = vld [vmem:[%s2756_s1 + $0x28] sm:$0xff]  ;;  %s1507_s22 = sshll.u32 %s1872_s21, 4  ;;  %s1508_s22 = int_to_ptr.vmem [resolvable:$true] %s1507_s22 }
  0x17   :  { %348 = vmax.xlane.f32.xlu1 %v347_v23  ;;  %345 = vmax.xlane.f32.xlu0 %v344_v24  ;;  %v1559_v57 = vcvt.f32.s32 %v1558_v53  ;;  %v1570_v3 = vtrunc.f32 %v166_v61  ;;  %v1564_v6 = vtrunc.f32 %v2098_v62  ;;  %v171_v7 = vld [vmem:[%s2756_s1 + $0x60] sm:$0xff]  ;;  %v1566_v16 = vtrunc.f32 %v2107_v8  ;;  %v173_v19 = vld [vmem:[%s2756_s1 + $0x70] sm:$0xff] }
  0x18   :  { %v1557_v59 = vcvt.f32.s32 %v1556_v54  ;;  %v1563_v63 = vcvt.f32.s32 %v1562_v58  ;;  %v1561_v4 = vcvt.f32.s32 %v1560_v60  ;;  %v1580_v12 = vtrunc.f32 %v171_v7  ;;  %v2116_v20 = vld [vmem:[%s2756_s1 + $0x30] sm:$0xff]  ;;  %v179_v54 = vld [vmem:[%s2756_s1 + $0xa0] sm:$0xff] }
  0x19   :  { %v1571_v11 = vcvt.f32.s32 %v1570_v3  ;;  %v1565_v15 = vcvt.f32.s32 %v1564_v6  ;;  %v1584_v24 = vtrunc.f32 %v173_v19  ;;  %v170_v3 = vld [vmem:[%s2756_s1 + $0x58] sm:$0xff] }
  0x1a   :  { %v1581_v23 = vcvt.f32.s32 %v1580_v12  ;;  %v183_v12 = vld [vmem:[%s2756_s1 + $0xc0] sm:$0xff] }
  0x1b   :  { %354 = vmax.xlane.f32.xlu1 %v353_v27  ;;  %351 = vmax.xlane.f32.xlu0 %v350_v28  ;;  %v1567_v27 = vcvt.f32.s32 %v1566_v16  ;;  %v1568_v28 = vtrunc.f32 %v2116_v20  ;;  %v1604_v19 = vtrunc.f32 %v183_v12 }
  0x1f   :  { %360 = vmax.xlane.f32.xlu1 %v359_v31  ;;  %357 = vmax.xlane.f32.xlu0 %v356_v32  ;;  %v175_v31 = vld [vmem:[%s2756_s1 + $0x80] sm:$0xff] }
  0x20   :  { %v167_v32 = vld [vmem:[%s2756_s1 + $0x40] sm:$0xff] }
  0x23   :  { %366 = vmax.xlane.f32.xlu1 %v365_v35  ;;  %363 = vmax.xlane.f32.xlu0 %v362_v36  ;;  %v1585_v35 = vcvt.f32.s32 %v1584_v24  ;;  %v1588_v36 = vtrunc.f32 %v175_v31 }
  0x27   :  { %372 = vmax.xlane.f32.xlu1 %v371_v39  ;;  %369 = vmax.xlane.f32.xlu0 %v368_v40  ;;  %v1569_v39 = vcvt.f32.s32 %v1568_v28  ;;  %v1572_v40 = vtrunc.f32 %v167_v32  ;;  %v1605_v28 = vcvt.f32.s32 %v1604_v19 }
  0x2b   :  { %378 = vmax.xlane.f32.xlu1 %v377_v43  ;;  %375 = vmax.xlane.f32.xlu0 %v374_v44  ;;  %v177_v43 = vld [vmem:[%s2756_s1 + $0x90] sm:$0xff]  ;;  %v168_v44 = vld [vmem:[%s2756_s1 + $0x48] sm:$0xff] }
  0x2c   :  { %v1574_v53 = vtrunc.f32 %v168_v44 }
  0x2e   :  { %v1575_v60 = vcvt.f32.s32 %v1574_v53  ;;  %v182_v53 = vld [vmem:[%s2756_s1 + $0xb8] sm:$0xff] }
  0x2f   :  { %381 = vmax.xlane.f32.xlu1 %v380_v47  ;;  %384 = vmax.xlane.f32.xlu0 %v383_v48  ;;  %v1589_v47 = vcvt.f32.s32 %v1588_v36  ;;  %v1592_v48 = vtrunc.f32 %v177_v43 }
  0x31   :  { %v1593_v58 = vcvt.f32.s32 %v1592_v48 }
  0x33   :  { %387 = vmax.xlane.f32.xlu1 %v386_v50  ;;  %v1573_v50 = vcvt.f32.s32 %v1572_v40  ;;  %v178_v40 = vld [vmem:[%s2756_s1 + $0x98] sm:$0xff] }
  0x34   :  { %v1594_v44 = vtrunc.f32 %v178_v40 }
  0x36   :  { %v1595_v48 = vcvt.f32.s32 %v1594_v44 }
  0x44   :  { %470 = vperm.xlu1 %1616, %v1559_v57   ;;  %v169_v57 = vld [vmem:[%s2756_s1 + $0x50] sm:$0xff] }
  0x45   :  { %467 = vperm.xlu0 %1615, %v1557_v59   ;;  %v1596_v59 = vtrunc.f32 %v179_v54  ;;  %v1576_v61 = vtrunc.f32 %v169_v57  ;;  %v1602_v57 = vtrunc.f32 %v182_v53 }
  0x47   :  { %v1577_v7 = vcvt.f32.s32 %v1576_v61 }
  0x48   :  { %476 = vperm.xlu1 %1616, %v1563_v63   ;;  %v181_v63 = vld [vmem:[%s2756_s1 + $0xb0] sm:$0xff] }
  0x49   :  { %473 = vperm.xlu0 %1615, %v1561_v4   ;;  %v1597_v4 = vcvt.f32.s32 %v1596_v59  ;;  %v1600_v6 = vtrunc.f32 %v181_v63 }
  0x4b   :  { %v1601_v16 = vcvt.f32.s32 %v1600_v6 }
  0x4c   :  { %488 = vperm.xlu1 %1616, %v1571_v11   ;;  %v1578_v11 = vtrunc.f32 %v170_v3 }
  0x4d   :  { %479 = vperm.xlu0 %1615, %v1565_v15   ;;  %v172_v15 = vld [vmem:[%s2756_s1 + $0x68] sm:$0xff] }
  0x4e   :  { %v1582_v24 = vtrunc.f32 %v172_v15 }
  0x50   :  { %503 = vperm.xlu1 %1616, %v1581_v23   ;;  %v1579_v23 = vcvt.f32.s32 %v1578_v11  ;;  %v1583_v31 = vcvt.f32.s32 %v1582_v24 }
  0x51   :  { %482 = vperm.xlu0 %1615, %v1567_v27   ;;  %v174_v27 = vld [vmem:[%s2756_s1 + $0x78] sm:$0xff] }
  0x52   :  { %v1586_v32 = vtrunc.f32 %v174_v27 }
  0x54   :  { %509 = vperm.xlu1 %1616, %v1585_v35   ;;  %v176_v35 = vld [vmem:[%s2756_s1 + $0x88] sm:$0xff]  ;;  %v1587_v36 = vcvt.f32.s32 %v1586_v32 }
  0x55   :  { %485 = vperm.xlu0 %1615, %v1569_v39   ;;  %v1590_v39 = vtrunc.f32 %v176_v35 }
  0x57   :  { %v1591_v43 = vcvt.f32.s32 %v1590_v39 }
  0x58   :  { %515 = vperm.xlu1 %1616, %v1589_v47   ;;  %v180_v47 = vld [vmem:[%s2756_s1 + $0xa8] sm:$0xff] }
  0x59   :  { %491 = vperm.xlu0 %1615, %v1573_v50   ;;  %v1598_v50 = vtrunc.f32 %v180_v47 }
  0x5b   :  { %v1599_v54 = vcvt.f32.s32 %v1598_v50 }
  0x5c   :  { %521 = vperm.xlu1 %1616, %v1593_v58   ;;  %v1603_v58 = vcvt.f32.s32 %v1602_v57 }
  0x5d   :  { %494 = vperm.xlu0 %1615, %v1575_v60  }
  0x60   :  { %527 = vperm.xlu1 %1616, %v1597_v4  }
  0x61   :  { %497 = vperm.xlu0 %1615, %v1577_v7  }
  0x64   :  { %533 = vperm.xlu1 %1616, %v1601_v16  }
  0x65   :  { %500 = vperm.xlu0 %1615, %v1579_v23  }
  0x68   :  { %539 = vperm.xlu1 %1616, %v1605_v28  }
  0x69   :  { %506 = vperm.xlu0 %1615, %v1583_v31  }
  0x6d   :  { %512 = vperm.xlu0 %1615, %v1587_v36  }
  0x71   :  { %518 = vperm.xlu0 %1615, %v1591_v43  }
  0x75   :  { %524 = vperm.xlu0 %1615, %v1595_v48  }
  0x79   :  { %530 = vperm.xlu0 %1615, %v1599_v54  }
  0x7d   :  { %536 = vperm.xlu0 %1615, %v1603_v58  }
  0x8c   :  { %v2164_v59 = vpop.xlane.xlu1 %321  ;;  %v2166_v60 = vpop.xlane.xlu0 %315 }
  0x8d   :  { %v391_v61 = vsub.f32 %v1896_v0, %v2164_v59  ;;  %v389_v63 = vsub.f32 %v1901_v1, %v2166_v60 }
  0x8f   :  { %v414_v3 = vmul.f32 1.442695, %v389_v63  ;;  %v418_v4 = vmul.f32 1.442695, %v391_v61 }
  0x90   :  { %v2172_v6 = vpop.xlane.xlu1 %324  ;;  %v2174_v7 = vpop.xlane.xlu0 %318 }
  0x91   :  { %v392_v11 = vsub.f32 %v1906_v2, %v2172_v6  ;;  %v390_v12 = vsub.f32 %v1915_v5, %v2174_v7  ;;  %1677 = vpow2.f32 %v414_v3 }
  0x92   :  { %1679 = vpow2.f32 %v418_v4 }
  0x93   :  { %v416_v15 = vmul.f32 1.442695, %v390_v12  ;;  %v420_v16 = vmul.f32 1.442695, %v392_v11 }
  0x94   :  { %v2180_v19 = vpop.xlane.xlu1 %330  ;;  %v2182_v23 = vpop.xlane.xlu0 %327 }
  0x95   :  { %v394_v24 = vsub.f32 %v1924_v9, %v2180_v19  ;;  %v393_v27 = vsub.f32 %v1929_v10, %v2182_v23  ;;  %1681 = vpow2.f32 %v416_v15 }
  0x96   :  { %1683 = vpow2.f32 %v420_v16 }
  0x97   :  { %v422_v28 = vmul.f32 1.442695, %v393_v27  ;;  %v424_v31 = vmul.f32 1.442695, %v394_v24 }
  0x98   :  { %v2188_v32 = vpop.xlane.xlu1 %336  ;;  %v2190_v35 = vpop.xlane.xlu0 %333 }
  0x99   :  { %v396_v36 = vsub.f32 %v1938_v13, %v2188_v32  ;;  %v395_v39 = vsub.f32 %v1943_v14, %v2190_v35  ;;  %1685 = vpow2.f32 %v422_v28 }
  0x9a   :  { %1687 = vpow2.f32 %v424_v31 }
  0x9b   :  { %v426_v40 = vmul.f32 1.442695, %v395_v39  ;;  %v428_v43 = vmul.f32 1.442695, %v396_v36 }
  0x9c   :  { %v2196_v44 = vpop.xlane.xlu1 %342  ;;  %v2198_v47 = vpop.xlane.xlu0 %339 }
  0x9d   :  { %v398_v48 = vsub.f32 %v1952_v17, %v2196_v44  ;;  %v397_v50 = vsub.f32 %v1957_v18, %v2198_v47  ;;  %1689 = vpow2.f32 %v426_v40 }
  0x9e   :  { %v1678_v53 = vpop.eup %1677  ;;  %1691 = vpow2.f32 %v428_v43 }
  0x9f   :  { %v430_v54 = vmul.f32 1.442695, %v397_v50  ;;  %v432_v57 = vmul.f32 1.442695, %v398_v48  ;;  %v591_v61 = vsel %vm313_vm0, %v1678_v53, 0.0  ;;  %v1680_v3 = vpop.eup %1679 }
  0xa0   :  { %v2204_v58 = vpop.xlane.xlu1 %348  ;;  %v2207_v63 = vpop.xlane.xlu0 %345  ;;  %592 = vadd.xlane.f32.xlu0 %v591_v61  ;;  %v597_v16 = vsel %vm313_vm0, %v1680_v3, 0.0 }
  0xa1   :  { %2765 = vst [vmem:[#allocation10_spill] sm:$0xff] %v2204_v58  ;;  %2766 = vst [vmem:[#allocation11_spill] sm:$0xff] %v2207_v63  ;;  %v399_v4 = vsub.f32 %v1971_v22, %v2207_v63  ;;  %1693 = vpow2.f32 %v430_v54 }
  0xa2   :  { %v1682_v11 = vpop.eup %1681  ;;  %1695 = vpow2.f32 %v432_v57 }
  0xa3   :  { %v434_v12 = vmul.f32 1.442695, %v399_v4  ;;  %v594_v24 = vsel %vm313_vm0, %v1682_v11, 0.0  ;;  %v1684_v28 = vpop.eup %1683  ;;  %v400_v11 = vsub.f32 %v1966_v21, %v2204_v58 }
  0xa4   :  { %v2211_v15 = vpop.xlane.xlu1 %354  ;;  %v2215_v27 = vpop.xlane.xlu0 %351  ;;  %598 = vadd.xlane.f32.xlu0 %v597_v16  ;;  %595 = vadd.xlane.f32.xlu1 %v594_v24  ;;  %v600_v39 = vsel %vm313_vm0, %v1684_v28, 0.0 }
  0xa5   :  { %2767 = vst [vmem:[#allocation12_spill] sm:$0xff] %v2211_v15  ;;  %2768 = vst [vmem:[#allocation13_spill] sm:$0xff] %v2215_v27  ;;  %1697 = vpow2.f32 %v434_v12 }
  0xa6   :  { %v1686_v31 = vpop.eup %1685 }
  0xa7   :  { %v603_v40 = vsel %vm313_vm0, %v1686_v31, 0.0  ;;  %v1688_v48 = vpop.eup %1687 }
  0xa8   :  { %v2217_v36 = vpop.xlane.xlu1 %360  ;;  %v2221_v43 = vpop.xlane.xlu0 %357  ;;  %601 = vadd.xlane.f32.xlu0 %v600_v39  ;;  %604 = vadd.xlane.f32.xlu1 %v603_v40  ;;  %v606_v54 = vsel %vm313_vm0, %v1688_v48, 0.0  ;;  %v436_v40 = vmul.f32 1.442695, %v400_v11  ;;  %v401_v48 = vsub.f32 %v1985_v26, %v2215_v27  ;;  %v464_v11 = vlaneseq }
  0xa9   :  { %2769 = vst [vmem:[#allocation14_spill] sm:$0xff] %v2217_v36  ;;  %2770 = vst [vmem:[#allocation15_spill] sm:$0xff] %v2221_v43  ;;  %v403_v27 = vsub.f32 %v1999_v30, %v2221_v43 }
  0xaa   :  { %v1690_v50 = vpop.eup %1689  ;;  %1699 = vpow2.f32 %v436_v40  ;;  %v404_v40 = vsub.f32 %v1994_v29, %v2217_v36 }
  0xab   :  { %v609_v57 = vsel %vm313_vm0, %v1690_v50, 0.0  ;;  %v1692_v3 = vpop.eup %1691 }
  0xac   :  { %v2223_v53 = vpop.xlane.xlu1 %366  ;;  %v2227_v61 = vpop.xlane.xlu0 %363  ;;  %607 = vadd.xlane.f32.xlu0 %v606_v54  ;;  %610 = vadd.xlane.f32.xlu1 %v609_v57  ;;  %v612_v16 = vsel %vm313_vm0, %v1692_v3, 0.0 }
  0xae   :  { %v1694_v4 = vpop.eup %1693 }
  0xaf   :  { %v615_v24 = vsel %vm313_vm0, %v1694_v4, 0.0  ;;  %v1696_v31 = vpop.eup %1695  ;;  %v402_v4 = vsub.f32 %v1980_v25, %v2211_v15 }
  0xb0   :  { %v2231_v12 = vpop.xlane.xlu1 %372  ;;  %v2235_v28 = vpop.xlane.xlu0 %369  ;;  %613 = vadd.xlane.f32.xlu0 %v612_v16  ;;  %616 = vadd.xlane.f32.xlu1 %v615_v24  ;;  %v618_v54 = vsel %vm313_vm0, %v1696_v31, 0.0  ;;  %v438_v16 = vmul.f32 1.442695, %v401_v48 }
  0xb1   :  { %v440_v58 = vmul.f32 1.442695, %v402_v4  ;;  %v444_v4 = vmul.f32 1.442695, %v404_v40 }
  0xb2   :  { %v1698_v39 = vpop.eup %1697  ;;  %1701 = vpow2.f32 %v438_v16 }
  0xb3   :  { %v621_v57 = vsel %vm313_vm0, %v1698_v39, 0.0  ;;  %1703 = vpow2.f32 %v440_v58 }
  0xb4   :  { %v2239_v50 = vpop.xlane.xlu1 %378  ;;  %619 = vadd.xlane.f32.xlu0 %v618_v54  ;;  %622 = vadd.xlane.f32.xlu1 %v621_v57  ;;  %v2243_v3 = vpop.xlane.xlu0 %375  ;;  %v2255_v54 = vand.u32 127, %v464_v11  ;;  %v442_v57 = vmul.f32 1.442695, %v403_v27  ;;  %v405_v11 = vsub.f32 %v2013_v34, %v2227_v61 }
  0xb6   :  { %1705 = vpow2.f32 %v442_v57 }
  0xb7   :  { %v1700_v27 = vpop.eup %1699  ;;  %1707 = vpow2.f32 %v444_v4 }
  0xb8   :  { %v2247_v24 = vpop.xlane.xlu1 %381  ;;  %v2251_v31 = vpop.xlane.xlu0 %384  ;;  %v624_v40 = vsel %vm313_vm0, %v1700_v27, 0.0 }
  0xbc   :  { %v2253_v39 = vpop.xlane.xlu1 %387 }
  0xbf   :  { %v1702_v57 = vpop.eup %1701 }
  0xc0   :  { %v471_v48 = vpop.permute.xlu1 %470  ;;  %v468_v15 = vpop.permute.xlu0 %467 }
  0xc1   :  { %vm542_vm1 = vcmp.eq.s32.totalorder %v2255_v54, %v471_v48  ;;  %vm541_vm2 = vcmp.eq.s32.totalorder %v2255_v54, %v468_v15  ;;  %v446_v15 = vmul.f32 1.442695, %v405_v11  ;;  %v1704_v11 = vpop.eup %1703 }
  0xc2   :  { %v567_v16 = vsel %vm542_vm1, %v1915_v5, 0.0  ;;  %v566_v43 = vsel %vm541_vm2, %v1901_v1, 0.0  ;;  %v406_v1 = vsub.f32 %v2008_v33, %v2223_v53 }
  0xc3   :  { %v669_v63 = vsel %vm313_vm0, %v567_v16, 0.0  ;;  %v666_v58 = vsel %vm313_vm0, %v566_v43, 0.0  ;;  %1709 = vpow2.f32 %v446_v15 }
  0xc4   :  { %v477_v36 = vpop.permute.xlu1 %476  ;;  %670 = vadd.xlane.f32.xlu1 %v669_v63  ;;  %667 = vadd.xlane.f32.xlu0 %v666_v58  ;;  %v474_v48 = vpop.permute.xlu0 %473  ;;  %v407_v58 = vsub.f32 %v2027_v38, %v2235_v28 }
  0xc5   :  { %vm544_vm3 = vcmp.eq.s32.totalorder %v2255_v54, %v477_v36  ;;  %vm543_vm4 = vcmp.eq.s32.totalorder %v2255_v54, %v474_v48  ;;  %v448_v36 = vmul.f32 1.442695, %v406_v1 }
  0xc6   :  { %v568_v5 = vsel %vm543_vm4, %v1896_v0, 0.0  ;;  %v569_v16 = vsel %vm544_vm3, %v1906_v2, 0.0  ;;  %v627_v0 = vsel %vm313_vm0, %v1702_v57, 0.0  ;;  %v408_v2 = vsub.f32 %v2022_v37, %v2231_v12 }
  0xc7   :  { %v672_v43 = vsel %vm313_vm0, %v568_v5, 0.0  ;;  %v675_v4 = vsel %vm313_vm0, %v569_v16, 0.0  ;;  %1711 = vpow2.f32 %v448_v36  ;;  %v450_v1 = vmul.f32 1.442695, %v407_v58 }
  0xc8   :  { %625 = vadd.xlane.f32.xlu0 %v624_v40  ;;  %673 = vadd.xlane.f32.xlu1 %v672_v43  ;;  %v480_v63 = vpop.permute.xlu0 %479  ;;  %v630_v5 = vsel %vm313_vm0, %v1704_v11, 0.0  ;;  %v1706_v40 = vpop.eup %1705  ;;  %v409_v16 = vsub.f32 %v2041_v42, %v2243_v3 }
  0xc9   :  { %vm545_vm5 = vcmp.eq.s32.totalorder %v2255_v54, %v480_v63  ;;  %v489_v63 = vpop.permute.xlu1 %488  ;;  %1713 = vpow2.f32 %v450_v1  ;;  %v633_v36 = vsel %vm313_vm0, %v1706_v40, 0.0  ;;  %v411_v40 = vsub.f32 %v2050_v45, %v2247_v24 }
  0xca   :  { %v570_v48 = vsel %vm545_vm5, %v1929_v10, 0.0  ;;  %v452_v10 = vmul.f32 1.442695, %v408_v2  ;;  %vm548_vm8 = vcmp.eq.s32.totalorder %v2255_v54, %v489_v63 }
  0xcb   :  { %v678_v15 = vsel %vm313_vm0, %v570_v48, 0.0 }
  0xcc   :  { %628 = vadd.xlane.f32.xlu0 %v627_v0  ;;  %676 = vadd.xlane.f32.xlu1 %v675_v4  ;;  %v483_v27 = vpop.permute.xlu0 %482  ;;  %v1708_v0 = vpop.eup %1707  ;;  %1715 = vpow2.f32 %v452_v10 }
  0xcd   :  { %vm546_vm6 = vcmp.eq.s32.totalorder %v2255_v54, %v483_v27  ;;  %v454_v27 = vmul.f32 1.442695, %v409_v16  ;;  %v636_v48 = vsel %vm313_vm0, %v1708_v0, 0.0 }
  0xce   :  { %v571_v57 = vsel %vm546_vm6, %v1924_v9, 0.0  ;;  %v410_v9 = vsub.f32 %v2036_v41, %v2239_v50 }
  0xcf   :  { %v681_v58 = vsel %vm313_vm0, %v571_v57, 0.0  ;;  %1717 = vpow2.f32 %v454_v27  ;;  %v504_v27 = vpop.permute.xlu1 %503 }
  0xd0   :  { %631 = vadd.xlane.f32.xlu0 %v630_v5  ;;  %679 = vadd.xlane.f32.xlu1 %v678_v15  ;;  %v486_v43 = vpop.permute.xlu0 %485  ;;  %v1710_v1 = vpop.eup %1709  ;;  %v573_v15 = vsel %vm548_vm8, %v1938_v13, 0.0  ;;  %v412_v13 = vsub.f32 %v2055_v46, %v2251_v31  ;;  %vm553_vm13 = vcmp.eq.s32.totalorder %v2255_v54, %v504_v27 }
  0xd1   :  { %vm547_vm7 = vcmp.eq.s32.totalorder %v2255_v54, %v486_v43  ;;  %v639_v43 = vsel %vm313_vm0, %v1710_v1, 0.0  ;;  %v687_v57 = vsel %vm313_vm0, %v573_v15, 0.0 }
  0xd2   :  { %v572_v11 = vsel %vm547_vm7, %v1943_v14, 0.0  ;;  %v456_v14 = vmul.f32 1.442695, %v410_v9 }
  0xd3   :  { %v684_v2 = vsel %vm313_vm0, %v572_v11, 0.0 }
  0xd4   :  { %634 = vadd.xlane.f32.xlu0 %v633_v36  ;;  %682 = vadd.xlane.f32.xlu1 %v681_v58  ;;  %v492_v4 = vpop.permute.xlu0 %491  ;;  %v1712_v10 = vpop.eup %1711  ;;  %1719 = vpow2.f32 %v456_v14  ;;  %v458_v36 = vmul.f32 1.442695, %v411_v40 }
  0xd5   :  { %vm549_vm9 = vcmp.eq.s32.totalorder %v2255_v54, %v492_v4  ;;  %v642_v58 = vsel %vm313_vm0, %v1712_v10, 0.0  ;;  %v510_v10 = vpop.permute.xlu1 %509 }
  0xd6   :  { %v574_v16 = vsel %vm549_vm9, %v1957_v18, 0.0  ;;  %v1714_v4 = vpop.eup %1713  ;;  %v460_v18 = vmul.f32 1.442695, %v412_v13  ;;  %1721 = vpow2.f32 %v458_v36  ;;  %vm555_vm15 = vcmp.eq.s32.totalorder %v2255_v54, %v510_v10 }
  0xd7   :  { %v690_v0 = vsel %vm313_vm0, %v574_v16, 0.0 }
  0xd8   :  { %637 = vadd.xlane.f32.xlu0 %v636_v48  ;;  %685 = vadd.xlane.f32.xlu1 %v684_v2  ;;  %v495_v5 = vpop.permute.xlu0 %494  ;;  %v413_v48 = vsub.f32 %v2064_v49, %v2253_v39  ;;  %v645_v2 = vsel %vm313_vm0, %v1714_v4, 0.0  ;;  %1723 = vpow2.f32 %v460_v18 }
  0xd9   :  { %vm550_vm10 = vcmp.eq.s32.totalorder %v2255_v54, %v495_v5  ;;  %v1716_v5 = vpop.eup %1715 }
  0xda   :  { %v575_v9 = vsel %vm550_vm10, %v1952_v17, 0.0  ;;  %v462_v17 = vmul.f32 1.442695, %v413_v48  ;;  %v648_v40 = vsel %vm313_vm0, %v1716_v5, 0.0 }
  0xdb   :  { %v693_v1 = vsel %vm313_vm0, %v575_v9, 0.0 }
  0xdc   :  { %640 = vadd.xlane.f32.xlu0 %v639_v43  ;;  %688 = vadd.xlane.f32.xlu1 %v687_v57  ;;  %v498_v63 = vpop.permute.xlu0 %497  ;;  %v1718_v57 = vpop.eup %1717  ;;  %1725 = vpow2.f32 %v462_v17 }
  0xdd   :  { %vm551_vm11 = vcmp.eq.s32.totalorder %v2255_v54, %v498_v63 }
  0xde   :  { %v576_v14 = vsel %vm551_vm11, %v1971_v22, 0.0  ;;  %v651_v22 = vsel %vm313_vm0, %v1718_v57, 0.0  ;;  %vm83_vm11 = vcmask 7168  }
  0xdf   :  { %v696_v43 = vsel %vm313_vm0, %v576_v14, 0.0 }
  0xe0   :  { %643 = vadd.xlane.f32.xlu0 %v642_v58  ;;  %691 = vadd.xlane.f32.xlu1 %v690_v0  ;;  %v501_v11 = vpop.permute.xlu0 %500  ;;  %v578_v58 = vsel %vm553_vm13, %v1985_v26, 0.0  ;;  %v516_v0 = vpop.permute.xlu1 %515  ;;  %vm1092_vm13 = vcmp.gt.f32.partialorder %v2076_v52, 0.0 }
  0xe1   :  { %vm552_vm12 = vcmp.eq.s32.totalorder %v2255_v54, %v501_v11  ;;  %v1720_v36 = vpop.eup %1719  ;;  %vm557_vm2 = vcmp.eq.s32.totalorder %v2255_v54, %v516_v0 }
  0xe2   :  { %v577_v63 = vsel %vm552_vm12, %v1966_v21, 0.0  ;;  %v654_v4 = vsel %vm313_vm0, %v1720_v36, 0.0  ;;  %v702_v21 = vsel %vm313_vm0, %v578_v58, 0.0  ;;  %v582_v10 = vsel %vm557_vm2, %v2013_v34, 0.0 }
  0xe3   :  { %v699_v13 = vsel %vm313_vm0, %v577_v63, 0.0  ;;  %v1722_v11 = vpop.eup %1721  ;;  %vm1094_vm12 = vcmp.gt.f32.partialorder %v2088_v56, 0.0 }
  0xe4   :  { %646 = vadd.xlane.f32.xlu0 %v645_v2  ;;  %694 = vadd.xlane.f32.xlu1 %v693_v1  ;;  %v507_v15 = vpop.permute.xlu0 %506  ;;  %v657_v27 = vsel %vm313_vm0, %v1722_v11, 0.0  ;;  %v522_v2 = vpop.permute.xlu1 %521  ;;  %v580_v1 = vsel %vm555_vm15, %v1999_v30, 0.0  ;;  %vm1096_vm15 = vcmp.gt.f32.partialorder %v2098_v62, 0.0 }
  0xe5   :  { %vm554_vm14 = vcmp.eq.s32.totalorder %v2255_v54, %v507_v15  ;;  %v1724_v26 = vpop.eup %1723  ;;  %v708_v14 = vsel %vm313_vm0, %v580_v1, 0.0  ;;  %vm559_vm4 = vcmp.eq.s32.totalorder %v2255_v54, %v522_v2 }
  0xe6   :  { %v579_v18 = vsel %vm554_vm14, %v1980_v25, 0.0  ;;  %v660_v15 = vsel %vm313_vm0, %v1724_v26, 0.0  ;;  %vm1093_vm14 = vcmp.gt.f32.partialorder %v2071_v51, 0.0 }
  0xe7   :  { %v705_v48 = vsel %vm313_vm0, %v579_v18, 0.0 }
  0xe8   :  { %649 = vadd.xlane.f32.xlu0 %v648_v40  ;;  %697 = vadd.xlane.f32.xlu1 %v696_v43  ;;  %v513_v16 = vpop.permute.xlu0 %512  ;;  %v528_v40 = vpop.permute.xlu1 %527 }
  0xe9   :  { %vm556_vm1 = vcmp.eq.s32.totalorder %v2255_v54, %v513_v16  ;;  %v1726_v25 = vpop.eup %1725  ;;  %vm561_vm6 = vcmp.eq.s32.totalorder %v2255_v54, %v528_v40 }
  0xea   :  { %v581_v17 = vsel %vm556_vm1, %v1994_v29, 0.0  ;;  %v663_v43 = vsel %vm313_vm0, %v1726_v25, 0.0  ;;  %v714_v29 = vsel %vm313_vm0, %v582_v10, 0.0  ;;  %v586_v0 = vsel %vm561_vm6, %v2041_v42, 0.0 }
  0xeb   :  { %v711_v30 = vsel %vm313_vm0, %v581_v17, 0.0  ;;  %vm1097_vm1 = vcmp.gt.f32.partialorder %v2107_v8, 0.0 }
  0xec   :  { %652 = vadd.xlane.f32.xlu0 %v651_v22  ;;  %700 = vadd.xlane.f32.xlu1 %v699_v13  ;;  %v519_v9 = vpop.permute.xlu0 %518  ;;  %v584_v22 = vsel %vm559_vm4, %v2027_v38, 0.0  ;;  %v534_v13 = vpop.permute.xlu1 %533 }
  0xed   :  { %vm558_vm3 = vcmp.eq.s32.totalorder %v2255_v54, %v519_v9  ;;  %v720_v34 = vsel %vm313_vm0, %v584_v22, 0.0  ;;  %vm563_vm8 = vcmp.eq.s32.totalorder %v2255_v54, %v534_v13 }
  0xee   :  { %v583_v63 = vsel %vm558_vm3, %v2008_v33, 0.0  ;;  %v588_v11 = vsel %vm563_vm8, %v2050_v45, 0.0  ;;  %vm1098_vm3 = vcmp.gt.f32.partialorder %v2116_v20, 0.0 }
  0xef   :  { %v717_v16 = vsel %vm313_vm0, %v583_v63, 0.0  ;;  %v732_v42 = vsel %vm313_vm0, %v588_v11, 0.0 }
  0xf0   :  { %655 = vadd.xlane.f32.xlu0 %v654_v4  ;;  %703 = vadd.xlane.f32.xlu1 %v702_v21  ;;  %v525_v5 = vpop.permute.xlu0 %524  ;;  %v726_v4 = vsel %vm313_vm0, %v586_v0, 0.0 }
  0xf1   :  { %vm560_vm5 = vcmp.eq.s32.totalorder %v2255_v54, %v525_v5  ;;  %v1869_v5 = vmov 0.0  }
  0xf2   :  { %v585_v36 = vsel %vm560_vm5, %v2022_v37, 0.0  ;;  %v540_v37 = vpop.permute.xlu1 %539  ;;  %84 = vst.msk [vmem:[#allocation2] sm:$0xff] %vm83_vm11, %v1869_v5  ;;  %85 = vst.msk [vmem:[#allocation2 + $0x8] sm:$0xff] %vm83_vm11, %v1869_v5  ;;  %v1532_v56 = vsel %vm1093_vm14, 1.0, %v1869_v5 }
  0xf3   :  { %v723_v58 = vsel %vm313_vm0, %v585_v36, 0.0  ;;  %vm565_vm10 = vcmp.eq.s32.totalorder %v2255_v54, %v540_v37  ;;  %86 = vst.msk [vmem:[#allocation2 + $0x10] sm:$0xff] %vm83_vm11, %v1869_v5  ;;  %87 = vst.msk [vmem:[#allocation2 + $0x18] sm:$0xff] %vm83_vm11, %v1869_v5 }
  0xf4   :  { %658 = vadd.xlane.f32.xlu0 %v657_v27  ;;  %706 = vadd.xlane.f32.xlu1 %v705_v48  ;;  %v531_v57 = vpop.permute.xlu0 %530  ;;  %v590_v18 = vsel %vm565_vm10, %v2064_v49, 0.0  ;;  %88 = vst.msk [vmem:[#allocation2 + $0x20] sm:$0xff] %vm83_vm11, %v1869_v5  ;;  %89 = vst.msk [vmem:[#allocation2 + $0x28] sm:$0xff] %vm83_vm11, %v1869_v5 }
  0xf5   :  { %vm562_vm7 = vcmp.eq.s32.totalorder %v2255_v54, %v531_v57  ;;  %v738_v27 = vsel %vm313_vm0, %v590_v18, 0.0  ;;  %90 = vst.msk [vmem:[#allocation2 + $0x30] sm:$0xff] %vm83_vm11, %v1869_v5  ;;  %91 = vst.msk [vmem:[#allocation2 + $0x38] sm:$0xff] %vm83_vm11, %v1869_v5 }
  0xf6   :  { %v587_v38 = vsel %vm562_vm7, %v2036_v41, 0.0  ;;  %92 = vst.msk [vmem:[#allocation2 + $0x40] sm:$0xff] %vm83_vm11, %v1869_v5  ;;  %93 = vst.msk [vmem:[#allocation2 + $0x48] sm:$0xff] %vm83_vm11, %v1869_v5 }
  0xf7   :  { %v729_v21 = vsel %vm313_vm0, %v587_v38, 0.0  ;;  %94 = vst.msk [vmem:[#allocation2 + $0x50] sm:$0xff] %vm83_vm11, %v1869_v5  ;;  %95 = vst.msk [vmem:[#allocation2 + $0x58] sm:$0xff] %vm83_vm11, %v1869_v5 }
  0xf8   :  { %661 = vadd.xlane.f32.xlu0 %v660_v15  ;;  %709 = vadd.xlane.f32.xlu1 %v708_v14  ;;  %v537_v33 = vpop.permute.xlu0 %536  ;;  %96 = vst.msk [vmem:[#allocation2 + $0x60] sm:$0xff] %vm83_vm11, %v1869_v5  ;;  %97 = vst.msk [vmem:[#allocation2 + $0x68] sm:$0xff] %vm83_vm11, %v1869_v5 }
  0xf9   :  { %vm564_vm9 = vcmp.eq.s32.totalorder %v2255_v54, %v537_v33  ;;  %98 = vst.msk [vmem:[#allocation2 + $0x70] sm:$0xff] %vm83_vm11, %v1869_v5  ;;  %99 = vst.msk [vmem:[#allocation2 + $0x78] sm:$0xff] %vm83_vm11, %v1869_v5 }
  0xfa   :  { %v589_v9 = vsel %vm564_vm9, %v2055_v46, 0.0  ;;  %100 = vst.msk [vmem:[#allocation2 + $0x80] sm:$0xff] %vm83_vm11, %v1869_v5  ;;  %101 = vst.msk [vmem:[#allocation2 + $0x88] sm:$0xff] %vm83_vm11, %v1869_v5 }
  0xfb   :  { %v735_v41 = vsel %vm313_vm0, %v589_v9, 0.0  ;;  %102 = vst.msk [vmem:[#allocation2 + $0x90] sm:$0xff] %vm83_vm11, %v1869_v5  ;;  %103 = vst.msk [vmem:[#allocation2 + $0x98] sm:$0xff] %vm83_vm11, %v1869_v5  ;;  %vm1095_vm0 = vcmp.gt.f32.partialorder %v2083_v55, 0.0 }
  0xfc   :  { %664 = vadd.xlane.f32.xlu0 %v663_v43  ;;  %712 = vadd.xlane.f32.xlu1 %v711_v30  ;;  %104 = vst.msk [vmem:[#allocation2 + $0xa0] sm:$0xff] %vm83_vm11, %v1869_v5  ;;  %105 = vst.msk [vmem:[#allocation2 + $0xa8] sm:$0xff] %vm83_vm11, %v1869_v5 }
  0xfd   :  { %106 = vst.msk [vmem:[#allocation2 + $0xb0] sm:$0xff] %vm83_vm11, %v1869_v5  ;;  %107 = vst.msk [vmem:[#allocation2 + $0xb8] sm:$0xff] %vm83_vm11, %v1869_v5 }
  0xfe   :  { %108 = vst.msk [vmem:[#allocation2 + $0xc0] sm:$0xff] %vm83_vm11, %v1869_v5  ;;  %109 = vst.msk [vmem:[#allocation3] sm:$0xff] %vm83_vm11, %v1869_v5 }
  0xff   :  { %110 = vst.msk [vmem:[#allocation3 + $0x8] sm:$0xff] %vm83_vm11, %v1869_v5  ;;  %111 = vst.msk [vmem:[#allocation3 + $0x10] sm:$0xff] %vm83_vm11, %v1869_v5 }
 0x100   :  { %715 = vadd.xlane.f32.xlu0 %v714_v29  ;;  %718 = vadd.xlane.f32.xlu1 %v717_v16  ;;  %112 = vst.msk [vmem:[#allocation3 + $0x18] sm:$0xff] %vm83_vm11, %v1869_v5  ;;  %113 = vst.msk [vmem:[#allocation3 + $0x20] sm:$0xff] %vm83_vm11, %v1869_v5 }
 0x101   :  { %114 = vst.msk [vmem:[#allocation3 + $0x28] sm:$0xff] %vm83_vm11, %v1869_v5  ;;  %115 = vst.msk [vmem:[#allocation3 + $0x30] sm:$0xff] %vm83_vm11, %v1869_v5 }
 0x102   :  { %116 = vst.msk [vmem:[#allocation3 + $0x38] sm:$0xff] %vm83_vm11, %v1869_v5  ;;  %117 = vst.msk [vmem:[#allocation3 + $0x40] sm:$0xff] %vm83_vm11, %v1869_v5 }
 0x103   :  { %118 = vst.msk [vmem:[#allocation3 + $0x48] sm:$0xff] %vm83_vm11, %v1869_v5  ;;  %119 = vst.msk [vmem:[#allocation3 + $0x50] sm:$0xff] %vm83_vm11, %v1869_v5 }
 0x104   :  { %721 = vadd.xlane.f32.xlu0 %v720_v34  ;;  %724 = vadd.xlane.f32.xlu1 %v723_v58  ;;  %120 = vst.msk [vmem:[#allocation3 + $0x58] sm:$0xff] %vm83_vm11, %v1869_v5  ;;  %121 = vst.msk [vmem:[#allocation3 + $0x60] sm:$0xff] %vm83_vm11, %v1869_v5  ;;  %v1531_v34 = vsel %vm1092_vm13, 1.0, %v1869_v5  ;;  %v1533_v58 = vsel %vm1094_vm12, 1.0, %v1869_v5 }
 0x105   :  { %122 = vst.msk [vmem:[#allocation3 + $0x68] sm:$0xff] %vm83_vm11, %v1869_v5  ;;  %123 = vst.msk [vmem:[#allocation3 + $0x70] sm:$0xff] %vm83_vm11, %v1869_v5  ;;  %v1617_v9 = vpack.i.bf16 %v1532_v56, %v1531_v34 }
 0x106   :  { %124 = vst.msk [vmem:[#allocation3 + $0x78] sm:$0xff] %vm83_vm11, %v1869_v5  ;;  %125 = vst.msk [vmem:[#allocation3 + $0x80] sm:$0xff] %vm83_vm11, %v1869_v5 }
 0x107   :  { %126 = vst.msk [vmem:[#allocation3 + $0x88] sm:$0xff] %vm83_vm11, %v1869_v5  ;;  %127 = vst.msk [vmem:[#allocation3 + $0x90] sm:$0xff] %vm83_vm11, %v1869_v5 }
 0x108   :  { %727 = vadd.xlane.f32.xlu0 %v726_v4  ;;  %730 = vadd.xlane.f32.xlu1 %v729_v21  ;;  %128 = vst.msk [vmem:[#allocation3 + $0x98] sm:$0xff] %vm83_vm11, %v1869_v5  ;;  %129 = vst.msk [vmem:[#allocation3 + $0xa0] sm:$0xff] %vm83_vm11, %v1869_v5 }
 0x109   :  { %130 = vst.msk [vmem:[#allocation3 + $0xa8] sm:$0xff] %vm83_vm11, %v1869_v5  ;;  %131 = vst.msk [vmem:[#allocation3 + $0xb0] sm:$0xff] %vm83_vm11, %v1869_v5 }
 0x10a   :  { %132 = vst.msk [vmem:[#allocation3 + $0xb8] sm:$0xff] %vm83_vm11, %v1869_v5  ;;  %133 = vst.msk [vmem:[#allocation3 + $0xc0] sm:$0xff] %vm83_vm11, %v1869_v5 }
 0x10c   :  { %733 = vadd.xlane.f32.xlu0 %v732_v42  ;;  %736 = vadd.xlane.f32.xlu1 %v735_v41 }
 0x110   :  { %739 = vadd.xlane.f32.xlu0 %v738_v27 }
 0x129   :  { %v593_v48 = vpop.xlane.xlu0 %592 }
 0x12a   :  { %1727 = vlog2.f32 %v593_v48  ;;  %v1777_v48 = vld [vmem:[%s2756_s1 + $0x10] sm:$0xff] }
 0x12d   :  { %v596_v26 = vpop.xlane.xlu1 %595  ;;  %v599_v45 = vpop.xlane.xlu0 %598 }
 0x12e   :  { %1729 = vlog2.f32 %v596_v26 }
 0x12f   :  { %1731 = vlog2.f32 %v599_v45 }
 0x131   :  { %v605_v2 = vpop.xlane.xlu1 %604  ;;  %v602_v1 = vpop.xlane.xlu0 %601 }
 0x132   :  { %1733 = vlog2.f32 %v602_v1 }
 0x133   :  { %1735 = vlog2.f32 %v605_v2 }
 0x135   :  { %v2366_v46 = vpop.xlane.xlu1 %610  ;;  %v608_v54 = vpop.xlane.xlu0 %607 }
 0x136   :  { %1737 = vlog2.f32 %v608_v54  ;;  %v1778_v54 = vld [vmem:[%s2756_s1 + $0x38] sm:$0xff] }
 0x137   :  { %v1728_v14 = vpop.eup %1727  ;;  %1739 = vlog2.f32 %v2366_v46  ;;  %vm1099_vm2 = vcmp.gt.f32.partialorder %v1778_v54, 0.0 }
 0x138   :  { %v742_v17 = vmul.f32 0.6931472, %v1728_v14 }
 0x139   :  { %v617_v49 = vpop.xlane.xlu1 %616  ;;  %v614_v15 = vpop.xlane.xlu0 %613 }
 0x13a   :  { %v791_v63 = vadd.f32 %v742_v17, %v2166_v60  ;;  %1741 = vlog2.f32 %v614_v15  ;;  %v1535_v15 = vsel %vm1096_vm15, 1.0, %v1869_v5 }
 0x13b   :  { %v1730_v25 = vpop.eup %1729  ;;  %1743 = vlog2.f32 %v617_v49 }
 0x13c   :  { %v744_v40 = vmul.f32 0.6931472, %v1730_v25  ;;  %v1732_v57 = vpop.eup %1731  ;;  %v1779_v25 = vld [vmem:[%s2756_s1 + $0x18] sm:$0xff] }
 0x13d   :  { %v623_v43 = vpop.xlane.xlu1 %622  ;;  %v620_v30 = vpop.xlane.xlu0 %619  ;;  %v746_v22 = vmul.f32 0.6931472, %v1732_v57 }
 0x13e   :  { %v792_v10 = vadd.f32 %v744_v40, %v2174_v7  ;;  %v1534_v7 = vsel %vm1095_vm0, 1.0, %v1869_v5  ;;  %1745 = vlog2.f32 %v620_v30  ;;  %v1780_v40 = vld [vmem:[%s2756_s1 + $0x20] sm:$0xff] }
 0x13f   :  { %v1734_v33 = vpop.eup %1733  ;;  %v793_v11 = vadd.f32 %v746_v22, %v2164_v59  ;;  %v1622_v42 = vpack.i.bf16 %v1534_v7, %v1533_v58  ;;  %1747 = vlog2.f32 %v623_v43  ;;  %v1782_v7 = vld [vmem:[%s2756_s1 + $0x40] sm:$0xff] }
 0x140   :  { %v1736_v38 = vpop.eup %1735  ;;  %v748_v21 = vmul.f32 0.6931472, %v1734_v33  ;;  %vm1100_vm4 = vcmp.gt.f32.partialorder %v1782_v7, 0.0 }
 0x141   :  { %v750_v55 = vmul.f32 0.6931472, %v1736_v38  ;;  %v1784_v38 = vld [vmem:[%s2756_s1 + $0x30] sm:$0xff] }
 0x143   :  { %v1738_v18 = vpop.eup %1737  ;;  %v795_v2 = vadd.f32 %v750_v55, %v2182_v23  ;;  %v1536_v23 = vsel %vm1097_vm1, 1.0, %v1869_v5 }
 0x144   :  { %v752_v59 = vmul.f32 0.6931472, %v1738_v18  ;;  %v1740_v1 = vpop.eup %1739  ;;  %v1627_v8 = vpack.i.bf16 %v1536_v23, %v1535_v15 }
 0x145   :  { %v754_v14 = vmul.f32 0.6931472, %v1740_v1 }
 0x146   :  { %v796_v43 = vadd.f32 %v752_v59, %v2180_v19  ;;  %v1781_v19 = vld [vmem:[%s2756_s1 + $0x28] sm:$0xff] }
 0x147   :  { %v1742_v57 = vpop.eup %1741 }
 0x148   :  { %v756_v22 = vmul.f32 0.6931472, %v1742_v57  ;;  %v1744_v33 = vpop.eup %1743 }
 0x14d   :  { %v671_v29 = vpop.xlane.xlu1 %670  ;;  %v668_v16 = vpop.xlane.xlu0 %667 }
 0x14e   :  { %v817_v13 = vsub.f32 %v792_v10, %v671_v29  ;;  %v816_v36 = vsub.f32 %v791_v63, %v668_v16  ;;  %v1537_v29 = vsel %vm1098_vm3, 1.0, %v1869_v5  ;;  %v1538_v16 = vsel %vm1099_vm2, 1.0, %v1869_v5 }
 0x14f   :  { %v1632_v20 = vpack.i.bf16 %v1538_v16, %v1537_v29  ;;  %v2772_v16 = vld [vmem:[#allocation10_spill] sm:$0xff] }
 0x150   :  { %v892_v60 = vmul.f32 %v817_v13, %v2071_v51  ;;  %v891_v0 = vmul.f32 %v816_v36, %v2076_v52  ;;  %v794_v52 = vadd.f32 %v748_v21, %v2172_v6  ;;  %v797_v36 = vadd.f32 %v754_v14, %v2190_v35  ;;  %v1746_v35 = vpop.eup %1745 }
 0x151   :  { %v674_v37 = vpop.xlane.xlu1 %673  ;;  %v626_v4 = vpop.xlane.xlu0 %625  ;;  %v760_v18 = vmul.f32 0.6931472, %v1746_v35 }
 0x152   :  { %943 = vrot.lane.b32.xlu0 %v892_v60, %s1870_s29  ;;  %941 = vrot.lane.b32.xlu1 %v891_v0, %s1870_s29  ;;  %v818_v41 = vsub.f32 %v793_v11, %v674_v37  ;;  %1749 = vlog2.f32 %v626_v4  ;;  %v1783_v60 = vld [vmem:[%s2756_s1 + $0x48] sm:$0xff]  ;;  %v758_v0 = vmul.f32 0.6931472, %v1744_v33  ;;  %v798_v4 = vadd.f32 %v756_v22, %v2188_v32 }
 0x153   :  { %vm1101_vm5 = vcmp.gt.f32.partialorder %v1783_v60, 0.0 }
 0x154   :  { %v893_v26 = vmul.f32 %v1777_v48, %v818_v41  ;;  %v1540_v55 = vsel %vm1101_vm5, 1.0, %v1869_v5  ;;  %v1748_v41 = vpop.eup %1747 }
 0x155   :  { %v677_v51 = vpop.xlane.xlu1 %676  ;;  %v629_v27 = vpop.xlane.xlu0 %628 }
 0x156   :  { %1618 = vrot.lane.b32.xlu1 %v1617_v9, %s1870_s29  ;;  %1623 = vrot.lane.b32.xlu0 %v1622_v42, %s1870_s29  ;;  %v819_v45 = vsub.f32 %v794_v52, %v677_v51  ;;  %1751 = vlog2.f32 %v629_v27  ;;  %v1539_v42 = vsel %vm1100_vm4, 1.0, %v1869_v5  ;;  %v799_v27 = vadd.f32 %v758_v0, %v2198_v47 }
 0x157   :  { %v1637_v48 = vpack.i.bf16 %v1540_v55, %v1539_v42  ;;  %v800_v47 = vadd.f32 %v760_v18, %v2196_v44  ;;  %v2774_v55 = vld [vmem:[#allocation12_spill] sm:$0xff] }
 0x158   :  { %v894_v17 = vmul.f32 %v1779_v25, %v819_v45  ;;  %v1786_v45 = vld [vmem:[%s2756_s1 + $0x58] sm:$0xff] }
 0x159   :  { %v680_v6 = vpop.xlane.xlu1 %679  ;;  %v632_v46 = vpop.xlane.xlu0 %631  ;;  %vm1103_vm7 = vcmp.gt.f32.partialorder %v1786_v45, 0.0 }
 0x15a   :  { %v820_v49 = vsub.f32 %v795_v2, %v680_v6  ;;  %945 = vrot.lane.b32.xlu1 %v893_v26, %s1870_s29  ;;  %1753 = vlog2.f32 %v632_v46  ;;  %v1785_v26 = vld [vmem:[%s2756_s1 + $0x50] sm:$0xff]  ;;  %v762_v2 = vmul.f32 0.6931472, %v1748_v41  ;;  %v1542_v23 = vsel %vm1103_vm7, 1.0, %v1869_v5 }
 0x15b   :  { %vm1102_vm6 = vcmp.gt.f32.partialorder %v1785_v26, 0.0 }
 0x15c   :  { %v895_v30 = vmul.f32 %v1780_v40, %v820_v49  ;;  %v1541_v15 = vsel %vm1102_vm6, 1.0, %v1869_v5 }
 0x15d   :  { %v683_v62 = vpop.xlane.xlu1 %682  ;;  %v635_v10 = vpop.xlane.xlu0 %634 }
 0x15e   :  { %v821_v63 = vsub.f32 %v796_v43, %v683_v62  ;;  %949 = vrot.lane.b32.xlu0 %v895_v30, %s1870_s29  ;;  %947 = vrot.lane.b32.xlu1 %v894_v17, %s1870_s29  ;;  %1755 = vlog2.f32 %v635_v10  ;;  %v2771_v17 = vld [vmem:[#allocation11_spill] sm:$0xff]  ;;  %v1642_v62 = vpack.i.bf16 %v1542_v23, %v1541_v15  ;;  %v1792_v23 = vld [vmem:[%s2756_s1 + $0x88] sm:$0xff] }
 0x15f   :  { %v1750_v6 = vpop.eup %1749  ;;  %v801_v40 = vadd.f32 %v762_v2, %v2771_v17  ;;  %v1787_v10 = vld [vmem:[%s2756_s1 + $0x60] sm:$0xff]  ;;  %vm1109_vm13 = vcmp.gt.f32.partialorder %v1792_v23, 0.0  ;;  %v2776_v17 = vld [vmem:[#allocation14_spill] sm:$0xff] }
 0x160   :  { %v896_v13 = vmul.f32 %v1781_v19, %v821_v63  ;;  %v764_v14 = vmul.f32 0.6931472, %v1750_v6  ;;  %vm1104_vm8 = vcmp.gt.f32.partialorder %v1787_v10, 0.0  ;;  %v1788_v63 = vld [vmem:[%s2756_s1 + $0x68] sm:$0xff] }
 0x161   :  { %v686_v34 = vpop.xlane.xlu1 %685  ;;  %v638_v56 = vpop.xlane.xlu0 %637  ;;  %vm1105_vm9 = vcmp.gt.f32.partialorder %v1788_v63, 0.0 }
 0x162   :  { %v822_v58 = vsub.f32 %v797_v36, %v686_v34  ;;  %951 = vrot.lane.b32.xlu0 %v896_v13, %s1870_s29  ;;  %1628 = vrot.lane.b32.xlu1 %v1627_v8, %s1870_s29  ;;  %1757 = vlog2.f32 %v638_v56  ;;  %v802_v22 = vadd.f32 %v764_v14, %v2772_v16  ;;  %v1543_v34 = vsel %vm1104_vm8, 1.0, %v1869_v5 }
 0x163   :  { %v1752_v30 = vpop.eup %1751  ;;  %v1544_v56 = vsel %vm1105_vm9, 1.0, %v1869_v5 }
 0x164   :  { %v897_v37 = vmul.f32 %v1784_v38, %v822_v58  ;;  %v766_v8 = vmul.f32 0.6931472, %v1752_v30 }
 0x165   :  { %v689_v21 = vpop.xlane.xlu1 %688  ;;  %v641_v11 = vpop.xlane.xlu0 %640 }
 0x166   :  { %v823_v9 = vsub.f32 %v798_v4, %v689_v21  ;;  %953 = vrot.lane.b32.xlu1 %v897_v37, %s1870_s29  ;;  %1633 = vrot.lane.b32.xlu0 %v1632_v20, %s1870_s29  ;;  %1759 = vlog2.f32 %v641_v11  ;;  %v1647_v4 = vpack.i.bf16 %v1544_v56, %v1543_v34  ;;  %v1789_v21 = vld [vmem:[%s2756_s1 + $0x70] sm:$0xff]  ;;  %v1790_v11 = vld [vmem:[%s2756_s1 + $0x78] sm:$0xff] }
 0x167   :  { %v1754_v19 = vpop.eup %1753  ;;  %vm1106_vm10 = vcmp.gt.f32.partialorder %v1789_v21, 0.0  ;;  %vm1107_vm0 = vcmp.gt.f32.partialorder %v1790_v11, 0.0 }
 0x168   :  { %v898_v51 = vmul.f32 %v1778_v54, %v823_v9  ;;  %v768_v58 = vmul.f32 0.6931472, %v1754_v19 }
 0x169   :  { %v692_v52 = vpop.xlane.xlu1 %691  ;;  %v644_v59 = vpop.xlane.xlu0 %643 }
 0x16a   :  { %v824_v32 = vsub.f32 %v799_v27, %v692_v52  ;;  %955 = vrot.lane.b32.xlu1 %v898_v51, %s1870_s29  ;;  %1761 = vlog2.f32 %v644_v59  ;;  %v804_v41 = vadd.f32 %v768_v58, %v2774_v55  ;;  %v1545_v59 = vsel %vm1106_vm10, 1.0, %v1869_v5 }
 0x16b   :  { %v1756_v35 = vpop.eup %1755 }
 0x16c   :  { %v899_v1 = vmul.f32 %v1782_v7, %v824_v32  ;;  %v2773_v7 = vld [vmem:[#allocation13_spill] sm:$0xff]  ;;  %v770_v9 = vmul.f32 0.6931472, %v1756_v35  ;;  %v1546_v32 = vsel %vm1107_vm0, 1.0, %v1869_v5 }
 0x16d   :  { %v695_v46 = vpop.xlane.xlu1 %694  ;;  %v647_v54 = vpop.xlane.xlu0 %646 }
 0x16e   :  { %v825_v49 = vsub.f32 %v800_v47, %v695_v46  ;;  %957 = vrot.lane.b32.xlu0 %v899_v1, %s1870_s29  ;;  %1638 = vrot.lane.b32.xlu1 %v1637_v48, %s1870_s29  ;;  %1763 = vlog2.f32 %v647_v54  ;;  %v1791_v46 = vld [vmem:[%s2756_s1 + $0x80] sm:$0xff] }
 0x16f   :  { %v1758_v18 = vpop.eup %1757  ;;  %vm1108_vm12 = vcmp.gt.f32.partialorder %v1791_v46, 0.0 }
 0x170   :  { %v900_v25 = vmul.f32 %v1783_v60, %v825_v49  ;;  %v803_v60 = vadd.f32 %v766_v8, %v2773_v7  ;;  %v772_v48 = vmul.f32 0.6931472, %v1758_v18  ;;  %v1652_v49 = vpack.i.bf16 %v1546_v32, %v1545_v59 }
 0x171   :  { %v698_v43 = vpop.xlane.xlu1 %697  ;;  %v650_v44 = vpop.xlane.xlu0 %649 }
 0x172   :  { %v826_v57 = vsub.f32 %v801_v40, %v698_v43  ;;  %959 = vrot.lane.b32.xlu0 %v900_v25, %s1870_s29  ;;  %1765 = vlog2.f32 %v650_v44  ;;  %v806_v40 = vadd.f32 %v772_v48, %v2776_v17 }
 0x173   :  { %v1760_v1 = vpop.eup %1759 }
 0x174   :  { %v901_v29 = vmul.f32 %v1785_v26, %v826_v57  ;;  %v774_v14 = vmul.f32 0.6931472, %v1760_v1  ;;  %v1547_v57 = vsel %vm1108_vm12, 1.0, %v1869_v5 }
 0x175   :  { %v701_v13 = vpop.xlane.xlu1 %700  ;;  %v653_v36 = vpop.xlane.xlu0 %652 }
 0x176   :  { %v827_v33 = vsub.f32 %v802_v22, %v701_v13  ;;  %1643 = vrot.lane.b32.xlu0 %v1642_v62, %s1870_s29  ;;  %961 = vrot.lane.b32.xlu1 %v901_v29, %s1870_s29  ;;  %1767 = vlog2.f32 %v653_v36  ;;  %v807_v22 = vadd.f32 %v774_v14, %v2227_v61  ;;  %v1794_v61 = vld [vmem:[%s2756_s1 + $0x98] sm:$0xff] }
 0x177   :  { %v1762_v15 = vpop.eup %1761  ;;  %vm1111_vm15 = vcmp.gt.f32.partialorder %v1794_v61, 0.0  ;;  %v1798_v14 = vld [vmem:[%s2756_s1 + $0xb8] sm:$0xff] }
 0x178   :  { %v902_v20 = vmul.f32 %v1786_v45, %v827_v33  ;;  %v2775_v45 = vld [vmem:[#allocation15_spill] sm:$0xff]  ;;  %v776_v62 = vmul.f32 0.6931472, %v1762_v15  ;;  %vm1115_vm4 = vcmp.gt.f32.partialorder %v1798_v14, 0.0 }
 0x179   :  { %v704_v0 = vpop.xlane.xlu1 %703  ;;  %v656_v38 = vpop.xlane.xlu0 %655  ;;  %v805_v2 = vadd.f32 %v770_v9, %v2775_v45  ;;  %v1795_v9 = vld [vmem:[%s2756_s1 + $0xa0] sm:$0xff] }
 0x17a   :  { %v828_v37 = vsub.f32 %v803_v60, %v704_v0  ;;  %963 = vrot.lane.b32.xlu1 %v902_v20, %s1870_s29  ;;  %1769 = vlog2.f32 %v656_v38  ;;  %v808_v34 = vadd.f32 %v776_v62, %v2223_v53  ;;  %v1793_v20 = vld [vmem:[%s2756_s1 + $0x90] sm:$0xff]  ;;  %vm1112_vm1 = vcmp.gt.f32.partialorder %v1795_v9, 0.0 }
 0x17b   :  { %v1764_v30 = vpop.eup %1763  ;;  %vm1110_vm14 = vcmp.gt.f32.partialorder %v1793_v20, 0.0  ;;  %v1551_v45 = vsel %vm1112_vm1, 1.0, %v1869_v5 }
 0x17c   :  { %v903_v42 = vmul.f32 %v1787_v10, %v828_v37  ;;  %v778_v29 = vmul.f32 0.6931472, %v1764_v30 }
 0x17d   :  { %v707_v51 = vpop.xlane.xlu1 %706  ;;  %v659_v27 = vpop.xlane.xlu0 %658 }
 0x17e   :  { %v829_v52 = vsub.f32 %v804_v41, %v707_v51  ;;  %965 = vrot.lane.b32.xlu0 %v903_v42, %s1870_s29  ;;  %1648 = vrot.lane.b32.xlu1 %v1647_v4, %s1870_s29  ;;  %1771 = vlog2.f32 %v659_v27  ;;  %v809_v35 = vadd.f32 %v778_v29, %v2235_v28  ;;  %v1549_v28 = vsel %vm1110_vm14, 1.0, %v1869_v5 }
 0x17f   :  { %v1766_v8 = vpop.eup %1765  ;;  %v1550_v42 = vsel %vm1111_vm15, 1.0, %v1869_v5 }
 0x180   :  { %v904_v26 = vmul.f32 %v1788_v63, %v829_v52  ;;  %v1548_v63 = vsel %vm1109_vm13, 1.0, %v1869_v5  ;;  %v780_v33 = vmul.f32 0.6931472, %v1766_v8  ;;  %v1662_v32 = vpack.i.bf16 %v1550_v42, %v1549_v28  ;;  %v869_v28 = vld [vmem:[#allocation2 + $0x18] sm:$0xff] }
 0x181   :  { %v710_v47 = vpop.xlane.xlu1 %709  ;;  %v662_v6 = vpop.xlane.xlu0 %661  ;;  %v1657_v36 = vpack.i.bf16 %v1548_v63, %v1547_v57 }
 0x182   :  { %v830_v54 = vsub.f32 %v805_v2, %v710_v47  ;;  %967 = vrot.lane.b32.xlu0 %v904_v26, %s1870_s29  ;;  %1773 = vlog2.f32 %v662_v6  ;;  %v810_v4 = vadd.f32 %v780_v33, %v2231_v12  ;;  %v1796_v12 = vld [vmem:[%s2756_s1 + $0xa8] sm:$0xff] }
 0x183   :  { %v1768_v58 = vpop.eup %1767  ;;  %vm1113_vm2 = vcmp.gt.f32.partialorder %v1796_v12, 0.0 }
 0x184   :  { %v905_v25 = vmul.f32 %v1789_v21, %v830_v54  ;;  %v782_v37 = vmul.f32 0.6931472, %v1768_v58  ;;  %v1552_v2 = vsel %vm1113_vm2, 1.0, %v1869_v5 }
 0x185   :  { %v713_v43 = vpop.xlane.xlu1 %712  ;;  %v665_v44 = vpop.xlane.xlu0 %664 }
 0x186   :  { %v831_v10 = vsub.f32 %v806_v40, %v713_v43  ;;  %1653 = vrot.lane.b32.xlu0 %v1652_v49, %s1870_s29  ;;  %969 = vrot.lane.b32.xlu1 %v905_v25, %s1870_s29  ;;  %1775 = vlog2.f32 %v665_v44  ;;  %v811_v59 = vadd.f32 %v782_v37, %v2243_v3  ;;  %v1667_v49 = vpack.i.bf16 %v1552_v2, %v1551_v45  ;;  %v872_v45 = vld [vmem:[#allocation2 + $0x30] sm:$0xff] }
 0x187   :  { %v1770_v38 = vpop.eup %1769  ;;  %v1554_v44 = vsel %vm1115_vm4, 1.0, %v1869_v5 }
 0x188   :  { %v906_v16 = vmul.f32 %v1790_v11, %v831_v10  ;;  %v784_v27 = vmul.f32 0.6931472, %v1770_v38 }
 0x189   :  { %v719_v19 = vpop.xlane.xlu1 %718  ;;  %v716_v13 = vpop.xlane.xlu0 %715 }
 0x18a   :  { %v832_v56 = vsub.f32 %v807_v22, %v716_v13  ;;  %971 = vrot.lane.b32.xlu1 %v906_v16, %s1870_s29  ;;  %v833_v7 = vsub.f32 %v808_v34, %v719_v19  ;;  %v812_v54 = vadd.f32 %v784_v27, %v2239_v50  ;;  %v1799_v22 = vld [vmem:[%s2756_s1 + $0xc0] sm:$0xff] }
 0x18b   :  { %v1772_v11 = vpop.eup %1771  ;;  %vm1116_vm5 = vcmp.gt.f32.partialorder %v1799_v22, 0.0 }
 0x18c   :  { %v907_v60 = vmul.f32 %v1791_v46, %v832_v56  ;;  %v908_v55 = vmul.f32 %v1792_v23, %v833_v7  ;;  %v786_v52 = vmul.f32 0.6931472, %v1772_v11  ;;  %v1797_v23 = vld [vmem:[%s2756_s1 + $0xb0] sm:$0xff]  ;;  %v1555_v19 = vsel %vm1116_vm5, 1.0, %v1869_v5  ;;  %s1871_s1 = smov [#allocation4]  }
 0x18d   :  { %v725_v0 = vpop.xlane.xlu1 %724  ;;  %v722_v53 = vpop.xlane.xlu0 %721  ;;  %vm1114_vm3 = vcmp.gt.f32.partialorder %v1797_v23, 0.0  ;;  %v1068_v7 = vld [vmem:[#allocation3 + $0x8] sm:$0xff] }
 0x18e   :  { %v834_v21 = vsub.f32 %v809_v35, %v722_v53  ;;  %973 = vrot.lane.b32.xlu0 %v907_v60, %s1870_s29  ;;  %1658 = vrot.lane.b32.xlu1 %v1657_v36, %s1870_s29  ;;  %v835_v41 = vsub.f32 %v810_v4, %v725_v0  ;;  %v813_v3 = vadd.f32 %v786_v52, %v2247_v24  ;;  %v1553_v43 = vsel %vm1114_vm3, 1.0, %v1869_v5  ;;  %v867_v36 = vld [vmem:[#allocation2 + $0x8] sm:$0xff]  ;;  %v1069_v5 = vld [vmem:[#allocation3 + $0x10] sm:$0xff]  ;;  %v1070_v35 = vld [vmem:[#allocation3 + $0x18] sm:$0xff] }
 0x18f   :  { %v1774_v48 = vpop.eup %1773  ;;  %v1672_v29 = vpack.i.bf16 %v1554_v44, %v1553_v43  ;;  %v868_v0 = vld [vmem:[#allocation2 + $0x10] sm:$0xff]  ;;  %v874_v44 = vld [vmem:[#allocation2 + $0x40] sm:$0xff] }
 0x190   :  { %v909_v18 = vmul.f32 %v1793_v20, %v834_v21  ;;  %v910_v1 = vmul.f32 %v1794_v61, %v835_v41  ;;  %v788_v46 = vmul.f32 0.6931472, %v1774_v48  ;;  %v1067_v20 = vld [vmem:[#allocation3] sm:$0xff]  ;;  %v1072_v48 = vld [vmem:[#allocation3 + $0x28] sm:$0xff] }
 0x191   :  { %v728_v51 = vpop.xlane.xlu0 %727  ;;  %v731_v26 = vpop.xlane.xlu1 %730 }
 0x192   :  { %975 = vrot.lane.b32.xlu0 %v908_v55, %s1870_s29  ;;  %977 = vrot.lane.b32.xlu1 %v909_v18, %s1870_s29  ;;  %v836_v47 = vsub.f32 %v811_v59, %v728_v51  ;;  %v837_v25 = vsub.f32 %v812_v54, %v731_v26  ;;  %v814_v30 = vadd.f32 %v788_v46, %v2251_v31  ;;  %v871_v18 = vld [vmem:[#allocation2 + $0x28] sm:$0xff]  ;;  %v1073_v54 = vld [vmem:[#allocation3 + $0x30] sm:$0xff] }
 0x193   :  { %v1776_v15 = vpop.eup %1775 }
 0x194   :  { %v911_v50 = vmul.f32 %v1795_v9, %v836_v47  ;;  %v790_v40 = vmul.f32 0.6931472, %v1776_v15  ;;  %v912_v57 = vmul.f32 %v1796_v12, %v837_v25  ;;  %v870_v9 = vld [vmem:[#allocation2 + $0x20] sm:$0xff] }
 0x195   :  { %v734_v6 = vpop.xlane.xlu0 %733  ;;  %v737_v24 = vpop.xlane.xlu1 %736 }
 0x196   :  { %1663 = vrot.lane.b32.xlu0 %v1662_v32, %s1870_s29  ;;  %979 = vrot.lane.b32.xlu1 %v910_v1, %s1870_s29  ;;  %v838_v17 = vsub.f32 %v813_v3, %v734_v6  ;;  %v839_v62 = vsub.f32 %v814_v30, %v737_v24  ;;  %v815_v8 = vadd.f32 %v790_v40, %v2253_v39  ;;  %v866_v39 = vld [vmem:[#allocation2] sm:$0xff]  ;;  %v1071_v32 = vld [vmem:[#allocation3 + $0x20] sm:$0xff] }
 0x197   :  { %v1074_v3 = vld [vmem:[#allocation3 + $0x38] sm:$0xff] }
 0x198   :  { %v913_v10 = vmul.f32 %v1797_v23, %v838_v17  ;;  %v914_v31 = vmul.f32 %v1798_v14, %v839_v62  ;;  %v873_v14 = vld [vmem:[#allocation2 + $0x38] sm:$0xff] }
 0x199   :  { %v740_v63 = vpop.xlane.xlu0 %739 }
 0x19a   :  { %981 = vrot.lane.b32.xlu0 %v911_v50, %s1870_s29  ;;  %1668 = vrot.lane.b32.xlu1 %v1667_v49, %s1870_s29  ;;  %v840_v16 = vsub.f32 %v815_v8, %v740_v63  ;;  %v1075_v63 = vld [vmem:[#allocation3 + $0x40] sm:$0xff]  ;;  %v1076_v8 = vld [vmem:[#allocation3 + $0x48] sm:$0xff] }
 0x19c   :  { %v915_v13 = vmul.f32 %v1799_v22, %v840_v16  ;;  %v875_v22 = vld [vmem:[#allocation2 + $0x48] sm:$0xff] }
 0x19e   :  { %983 = vrot.lane.b32.xlu0 %v912_v57, %s1870_s29  ;;  %985 = vrot.lane.b32.xlu1 %v913_v10, %s1870_s29 }
 0x1a2   :  { %1673 = vrot.lane.b32.xlu0 %v1672_v29, %s1870_s29  ;;  %987 = vrot.lane.b32.xlu1 %v914_v31, %s1870_s29 }
 0x1a6   :  { %989 = vrot.lane.b32.xlu0 %v915_v13, %s1870_s29  ;;  %1240 = vrot.lane.b32.xlu1 %v1555_v19, %s1870_s29  ;;  %s1497_s29 = sshll.u32 %s1871_s1, 4  ;;  %s1498_s29 = int_to_ptr.vmem [resolvable:$true] %s1497_s29 }
 0x1a7   :  { %s1824_s25 = scalar_lea.vmem %s1498_s29, 16  ;;  %s1828_s26 = scalar_lea.vmem %s1498_s29, 32 }
 0x1a8   :  { %p1825_p0 = scmp.ne.s32.totalorder %s1498_s29, %s1824_s25  ;;  %p1829_p1 = scmp.lt.s32.totalorder %s1498_s29, %s1498_s29 }
 0x1a9   :  { %p1830_p2 = scmp.lt.s32.totalorder %s1828_s26, %s1824_s25 }
 0x1ab   :  { %p1831_p3 = por %p1830_p2, %p1829_p1 }
 0x1ad   :  { %p1832_p4 = pnand %p1831_p3, %p1825_p0 }
 0x1c4   :  { %v942_v33 = vpop.permute.xlu1 %941  ;;  %v944_v34 = vpop.permute.xlu0 %943 }
 0x1c5   :  { %v1016_v56 = vadd.f32 %v942_v33, %v866_v39  ;;  %v1017_v58 = vadd.f32 %v944_v34, %v867_v36 }
 0x1c7   :  { %1042 = vst.msk [vmem:[#allocation2] sm:$0xff] %vm83_vm11, %v1016_v56  ;;  %1043 = vst.msk [vmem:[#allocation2 + $0x8] sm:$0xff] %vm83_vm11, %v1017_v58 }
 0x1c8   :  { %v1619_v61 = vpop.permute.xlu1 %1618  ;;  %v1624_v60 = vpop.permute.xlu0 %1623 }
 0x1c9   :  { %v1800_v53 = vadd.low.f32.bf16 %v1067_v20, %v1619_v61  ;;  %v1801_v38 = vadd.high.f32.bf16 %v1068_v7, %v1619_v61  ;;  %v1802_v37 = vadd.low.f32.bf16 %v1069_v5, %v1624_v60  ;;  %v1803_v4 = vadd.high.f32.bf16 %v1070_v35, %v1624_v60  ;;  %v876_v61 = vld [vmem:[#allocation2 + $0x50] sm:$0xff] }
 0x1cb   :  { %1292 = vst.msk [vmem:[#allocation3] sm:$0xff] %vm83_vm11, %v1800_v53  ;;  %1293 = vst.msk [vmem:[#allocation3 + $0x8] sm:$0xff] %vm83_vm11, %v1801_v38  ;;  %v1077_v53 = vld [vmem:[#allocation3 + $0x50] sm:$0xff]  ;;  %v1078_v38 = vld [vmem:[#allocation3 + $0x58] sm:$0xff] }
 0x1cc   :  { %v946_v21 = vpop.permute.xlu1 %945  ;;  %1294 = vst.msk [vmem:[#allocation3 + $0x10] sm:$0xff] %vm83_vm11, %v1802_v37  ;;  %1295 = vst.msk [vmem:[#allocation3 + $0x18] sm:$0xff] %vm83_vm11, %v1803_v4 }
 0x1cd   :  { %v1018_v11 = vadd.f32 %v946_v21, %v868_v0 }
 0x1ce   :  { %v1320_v33 = vld [vmem:[#allocation2] sm:$0xff]  ;;  %v1321_v34 = vld [vmem:[#allocation2 + $0x8] sm:$0xff] }
 0x1cf   :  { %1044 = vst.msk [vmem:[#allocation2 + $0x10] sm:$0xff] %vm83_vm11, %v1018_v11  ;;  %v1345_v7 = vsel %vm83_vm11, %v1320_v33, 0.0  ;;  %v1346_v60 = vsel %vm83_vm11, %v1321_v34, 0.0 }
 0x1d0   :  { %v950_v42 = vpop.permute.xlu0 %949  ;;  %v948_v12 = vpop.permute.xlu1 %947 }
 0x1d1   :  { %v1020_v55 = vadd.f32 %v950_v42, %v870_v9  ;;  %v1019_v41 = vadd.f32 %v948_v12, %v869_v28  ;;  %v877_v28 = vld [vmem:[#allocation2 + $0x58] sm:$0xff] }
 0x1d2   :  { %v1406_v52 = vld [vmem:[#allocation3] sm:$0xff]  ;;  %v1407_v26 = vld [vmem:[#allocation3 + $0x8] sm:$0xff] }
 0x1d3   :  { %1046 = vst.msk [vmem:[#allocation2 + $0x20] sm:$0xff] %vm83_vm11, %v1020_v55  ;;  %1045 = vst.msk [vmem:[#allocation2 + $0x18] sm:$0xff] %vm83_vm11, %v1019_v41  ;;  %v1431_v2 = vsel %vm83_vm11, %v1406_v52, 0.0  ;;  %v1432_v49 = vsel %vm83_vm11, %v1407_v26, 0.0  ;;  %v1408_v23 = vld [vmem:[#allocation3 + $0x10] sm:$0xff]  ;;  %v1409_v43 = vld [vmem:[#allocation3 + $0x18] sm:$0xff]  ;;  %v1347_v41 = vadd.f32 %v1346_v60, %v1345_v7 }
 0x1d4   :  { %v952_v51 = vpop.permute.xlu0 %951  ;;  %v1629_v27 = vpop.permute.xlu1 %1628  ;;  %v1433_v17 = vadd.f32 %v1432_v49, %v1431_v2  ;;  %v1434_v40 = vsel %vm83_vm11, %v1408_v23, 0.0  ;;  %v1436_v29 = vsel %vm83_vm11, %v1409_v43, 0.0  ;;  %v879_v23 = vld [vmem:[#allocation2 + $0x68] sm:$0xff] }
 0x1d5   :  { %v1021_v59 = vadd.f32 %v952_v51, %v871_v18  ;;  %v1804_v1 = vadd.low.f32.bf16 %v1071_v32, %v1629_v27  ;;  %v1805_v47 = vadd.high.f32.bf16 %v1072_v48, %v1629_v27  ;;  %v878_v48 = vld [vmem:[#allocation2 + $0x60] sm:$0xff] }
 0x1d6   :  { %v1435_v57 = vadd.f32 %v1434_v40, %v1433_v17  ;;  %v1322_v5 = vld [vmem:[#allocation2 + $0x10] sm:$0xff] }
 0x1d7   :  { %1047 = vst.msk [vmem:[#allocation2 + $0x28] sm:$0xff] %vm83_vm11, %v1021_v59  ;;  %1296 = vst.msk [vmem:[#allocation3 + $0x20] sm:$0xff] %vm83_vm11, %v1804_v1  ;;  %v1348_v42 = vsel %vm83_vm11, %v1322_v5, 0.0 }
 0x1d8   :  { %v954_v6 = vpop.permute.xlu1 %953  ;;  %v1634_v46 = vpop.permute.xlu0 %1633  ;;  %1297 = vst.msk [vmem:[#allocation3 + $0x28] sm:$0xff] %vm83_vm11, %v1805_v47  ;;  %v1437_v39 = vadd.f32 %v1436_v29, %v1435_v57  ;;  %v1349_v32 = vadd.f32 %v1348_v42, %v1347_v41  ;;  %v882_v42 = vld [vmem:[#allocation2 + $0x80] sm:$0xff] }
 0x1d9   :  { %v1022_v15 = vadd.f32 %v954_v6, %v872_v45  ;;  %v1806_v25 = vadd.low.f32.bf16 %v1073_v54, %v1634_v46  ;;  %v1807_v50 = vadd.high.f32.bf16 %v1074_v3, %v1634_v46  ;;  %v1079_v6 = vld [vmem:[#allocation3 + $0x60] sm:$0xff]  ;;  %v1080_v46 = vld [vmem:[#allocation3 + $0x68] sm:$0xff] }
 0x1da   :  { %v1323_v11 = vld [vmem:[#allocation2 + $0x18] sm:$0xff]  ;;  %v1324_v45 = vld [vmem:[#allocation2 + $0x20] sm:$0xff] }
 0x1db   :  { %1048 = vst.msk [vmem:[#allocation2 + $0x30] sm:$0xff] %vm83_vm11, %v1022_v15  ;;  %1298 = vst.msk [vmem:[#allocation3 + $0x30] sm:$0xff] %vm83_vm11, %v1806_v25  ;;  %v1350_v27 = vsel %vm83_vm11, %v1323_v11, 0.0  ;;  %v1352_v25 = vsel %vm83_vm11, %v1324_v45, 0.0 }
 0x1dc   :  { %v956_v24 = vpop.permute.xlu1 %955  ;;  %1299 = vst.msk [vmem:[#allocation3 + $0x38] sm:$0xff] %vm83_vm11, %v1807_v50  ;;  %v1351_v2 = vadd.f32 %v1350_v27, %v1349_v32  ;;  %v1084_v32 = vld [vmem:[#allocation3 + $0x88] sm:$0xff] }
 0x1dd   :  { %v1023_v30 = vadd.f32 %v956_v24, %v873_v14 }
 0x1de   :  { %v1410_v16 = vld [vmem:[#allocation3 + $0x20] sm:$0xff]  ;;  %v1353_v24 = vadd.f32 %v1352_v25, %v1351_v2 }
 0x1df   :  { %1049 = vst.msk [vmem:[#allocation2 + $0x38] sm:$0xff] %vm83_vm11, %v1023_v30  ;;  %v1438_v56 = vsel %vm83_vm11, %v1410_v16, 0.0  ;;  %v1411_v20 = vld [vmem:[#allocation3 + $0x28] sm:$0xff]  ;;  %v1325_v15 = vld [vmem:[#allocation2 + $0x28] sm:$0xff] }
 0x1e0   :  { %v958_v62 = vpop.permute.xlu0 %957  ;;  %v1639_v10 = vpop.permute.xlu1 %1638  ;;  %v1439_v35 = vadd.f32 %v1438_v56, %v1437_v39  ;;  %v1440_v4 = vsel %vm83_vm11, %v1411_v20, 0.0  ;;  %v1082_v39 = vld [vmem:[#allocation3 + $0x78] sm:$0xff] }
 0x1e1   :  { %v1024_v31 = vadd.f32 %v958_v62, %v874_v44  ;;  %v1808_v19 = vadd.low.f32.bf16 %v1075_v63, %v1639_v10  ;;  %v1809_v13 = vadd.high.f32.bf16 %v1076_v8, %v1639_v10  ;;  %v1354_v44 = vsel %vm83_vm11, %v1325_v15, 0.0  ;;  %v880_v63 = vld [vmem:[#allocation2 + $0x70] sm:$0xff] }
 0x1e2   :  { %v1412_v9 = vld [vmem:[#allocation3 + $0x30] sm:$0xff]  ;;  %v1441_v51 = vadd.f32 %v1440_v4, %v1439_v35  ;;  %v1326_v40 = vld [vmem:[#allocation2 + $0x30] sm:$0xff]  ;;  %v1355_v16 = vadd.f32 %v1354_v44, %v1353_v24 }
 0x1e3   :  { %1050 = vst.msk [vmem:[#allocation2 + $0x40] sm:$0xff] %vm83_vm11, %v1024_v31  ;;  %1300 = vst.msk [vmem:[#allocation3 + $0x40] sm:$0xff] %vm83_vm11, %v1808_v19  ;;  %v1442_v59 = vsel %vm83_vm11, %v1412_v9, 0.0  ;;  %v1413_v26 = vld [vmem:[#allocation3 + $0x38] sm:$0xff]  ;;  %v1356_v29 = vsel %vm83_vm11, %v1326_v40, 0.0  ;;  %v1081_v31 = vld [vmem:[#allocation3 + $0x70] sm:$0xff] }
 0x1e4   :  { %v960_v36 = vpop.permute.xlu0 %959  ;;  %1301 = vst.msk [vmem:[#allocation3 + $0x48] sm:$0xff] %vm83_vm11, %v1809_v13  ;;  %v1443_v54 = vadd.f32 %v1442_v59, %v1441_v51  ;;  %v1444_v49 = vsel %vm83_vm11, %v1413_v26, 0.0  ;;  %v1357_v20 = vadd.f32 %v1356_v29, %v1355_v16  ;;  %v1083_v59 = vld [vmem:[#allocation3 + $0x80] sm:$0xff] }
 0x1e5   :  { %v1025_v58 = vadd.f32 %v960_v36, %v875_v22 }
 0x1e6   :  { %v1445_v43 = vadd.f32 %v1444_v49, %v1443_v54  ;;  %v1327_v57 = vld [vmem:[#allocation2 + $0x38] sm:$0xff] }
 0x1e7   :  { %1051 = vst.msk [vmem:[#allocation2 + $0x48] sm:$0xff] %vm83_vm11, %v1025_v58  ;;  %v1358_v22 = vsel %vm83_vm11, %v1327_v57, 0.0 }
 0x1e8   :  { %v1644_v0 = vpop.permute.xlu0 %1643  ;;  %v962_v37 = vpop.permute.xlu1 %961 }
 0x1e9   :  { %v1026_v21 = vadd.f32 %v962_v37, %v876_v61  ;;  %v1810_v12 = vadd.low.f32.bf16 %v1077_v53, %v1644_v0  ;;  %v1811_v55 = vadd.high.f32.bf16 %v1078_v38, %v1644_v0  ;;  %v881_v61 = vld [vmem:[#allocation2 + $0x78] sm:$0xff]  ;;  %v1359_v37 = vadd.f32 %v1358_v22, %v1357_v20 }
 0x1ea   :  { %v1414_v14 = vld [vmem:[#allocation3 + $0x40] sm:$0xff]  ;;  %v1328_v19 = vld [vmem:[#allocation2 + $0x40] sm:$0xff]  ;;  %v1085_v22 = vld [vmem:[#allocation3 + $0x90] sm:$0xff] }
 0x1eb   :  { %1052 = vst.msk [vmem:[#allocation2 + $0x50] sm:$0xff] %vm83_vm11, %v1026_v21  ;;  %1302 = vst.msk [vmem:[#allocation3 + $0x50] sm:$0xff] %vm83_vm11, %v1810_v12  ;;  %v1446_v10 = vsel %vm83_vm11, %v1414_v14, 0.0  ;;  %v1415_v8 = vld [vmem:[#allocation3 + $0x48] sm:$0xff]  ;;  %v1360_v35 = vsel %vm83_vm11, %v1328_v19, 0.0  ;;  %v1086_v19 = vld [vmem:[#allocation3 + $0x98] sm:$0xff] }
 0x1ec   :  { %v964_v18 = vpop.permute.xlu1 %963  ;;  %1303 = vst.msk [vmem:[#allocation3 + $0x58] sm:$0xff] %vm83_vm11, %v1811_v55  ;;  %v1447_v34 = vadd.f32 %v1446_v10, %v1445_v43  ;;  %v1448_v58 = vsel %vm83_vm11, %v1415_v8, 0.0  ;;  %v1361_v12 = vadd.f32 %v1360_v35, %v1359_v37  ;;  %v885_v10 = vld [vmem:[#allocation2 + $0x98] sm:$0xff]  ;;  %v1087_v37 = vld [vmem:[#allocation3 + $0xa0] sm:$0xff] }
 0x1ed   :  { %v1027_v52 = vadd.f32 %v964_v18, %v877_v28 }
 0x1ee   :  { %v1329_v7 = vld [vmem:[#allocation2 + $0x48] sm:$0xff]  ;;  %v1449_v21 = vadd.f32 %v1448_v58, %v1447_v34  ;;  %v886_v58 = vld [vmem:[#allocation2 + $0xa0] sm:$0xff] }
 0x1ef   :  { %1053 = vst.msk [vmem:[#allocation2 + $0x58] sm:$0xff] %vm83_vm11, %v1027_v52  ;;  %v1362_v28 = vsel %vm83_vm11, %v1329_v7, 0.0 }
 0x1f0   :  { %v966_v1 = vpop.permute.xlu0 %965  ;;  %v1649_v47 = vpop.permute.xlu1 %1648  ;;  %v1363_v26 = vadd.f32 %v1362_v28, %v1361_v12  ;;  %v887_v28 = vld [vmem:[#allocation2 + $0xa8] sm:$0xff]  ;;  %v888_v12 = vld [vmem:[#allocation2 + $0xb0] sm:$0xff] }
 0x1f1   :  { %v1028_v3 = vadd.f32 %v966_v1, %v878_v48  ;;  %v1812_v50 = vadd.low.f32.bf16 %v1079_v6, %v1649_v47  ;;  %v1813_v17 = vadd.high.f32.bf16 %v1080_v46, %v1649_v47  ;;  %v883_v1 = vld [vmem:[#allocation2 + $0x88] sm:$0xff]  ;;  %v884_v6 = vld [vmem:[#allocation2 + $0x90] sm:$0xff] }
 0x1f2   :  { %v1416_v33 = vld [vmem:[#allocation3 + $0x50] sm:$0xff]  ;;  %v1330_v38 = vld [vmem:[#allocation2 + $0x50] sm:$0xff] }
 0x1f3   :  { %1054 = vst.msk [vmem:[#allocation2 + $0x60] sm:$0xff] %vm83_vm11, %v1028_v3  ;;  %1304 = vst.msk [vmem:[#allocation3 + $0x60] sm:$0xff] %vm83_vm11, %v1812_v50  ;;  %v1450_v0 = vsel %vm83_vm11, %v1416_v33, 0.0  ;;  %v1417_v4 = vld [vmem:[#allocation3 + $0x58] sm:$0xff]  ;;  %v1364_v18 = vsel %vm83_vm11, %v1330_v38, 0.0 }
 0x1f4   :  { %v968_v30 = vpop.permute.xlu0 %967  ;;  %1305 = vst.msk [vmem:[#allocation3 + $0x68] sm:$0xff] %vm83_vm11, %v1813_v17  ;;  %v1451_v41 = vadd.f32 %v1450_v0, %v1449_v21  ;;  %v1452_v51 = vsel %vm83_vm11, %v1417_v4, 0.0  ;;  %v1365_v54 = vadd.f32 %v1364_v18, %v1363_v26  ;;  %v1088_v4 = vld [vmem:[#allocation3 + $0xa8] sm:$0xff] }
 0x1f5   :  { %v1029_v62 = vadd.f32 %v968_v30, %v879_v23 }
 0x1f6   :  { %v1331_v9 = vld [vmem:[#allocation2 + $0x58] sm:$0xff]  ;;  %v1453_v49 = vadd.f32 %v1452_v51, %v1451_v41 }
 0x1f7   :  { %1055 = vst.msk [vmem:[#allocation2 + $0x68] sm:$0xff] %vm83_vm11, %v1029_v62  ;;  %v1366_v45 = vsel %vm83_vm11, %v1331_v9, 0.0 }
 0x1f8   :  { %v1654_v13 = vpop.permute.xlu0 %1653  ;;  %v970_v36 = vpop.permute.xlu1 %969  ;;  %v1367_v24 = vadd.f32 %v1366_v45, %v1365_v54 }
 0x1f9   :  { %v1030_v56 = vadd.f32 %v970_v36, %v880_v63  ;;  %v1814_v60 = vadd.low.f32.bf16 %v1081_v31, %v1654_v13  ;;  %v1815_v5 = vadd.high.f32.bf16 %v1082_v39, %v1654_v13 }
 0x1fa   :  { %v1418_v55 = vld [vmem:[#allocation3 + $0x60] sm:$0xff]  ;;  %v1332_v48 = vld [vmem:[#allocation2 + $0x60] sm:$0xff] }
 0x1fb   :  { %1056 = vst.msk [vmem:[#allocation2 + $0x70] sm:$0xff] %vm83_vm11, %v1030_v56  ;;  %1306 = vst.msk [vmem:[#allocation3 + $0x70] sm:$0xff] %vm83_vm11, %v1814_v60  ;;  %v1454_v47 = vsel %vm83_vm11, %v1418_v55, 0.0  ;;  %v1419_v3 = vld [vmem:[#allocation3 + $0x68] sm:$0xff]  ;;  %v1368_v14 = vsel %vm83_vm11, %v1332_v48, 0.0 }
 0x1fc   :  { %v972_v53 = vpop.permute.xlu1 %971  ;;  %1307 = vst.msk [vmem:[#allocation3 + $0x78] sm:$0xff] %vm83_vm11, %v1815_v5  ;;  %v1455_v30 = vadd.f32 %v1454_v47, %v1453_v49  ;;  %v1456_v62 = vsel %vm83_vm11, %v1419_v3, 0.0  ;;  %v1369_v8 = vadd.f32 %v1368_v14, %v1367_v24  ;;  %v1089_v3 = vld [vmem:[#allocation3 + $0xb0] sm:$0xff] }
 0x1fd   :  { %v1031_v11 = vadd.f32 %v972_v53, %v881_v61 }
 0x1fe   :  { %v1333_v46 = vld [vmem:[#allocation2 + $0x68] sm:$0xff]  ;;  %v1457_v33 = vadd.f32 %v1456_v62, %v1455_v30 }
 0x1ff   :  { %1057 = vst.msk [vmem:[#allocation2 + $0x78] sm:$0xff] %vm83_vm11, %v1031_v11  ;;  %v1370_v57 = vsel %vm83_vm11, %v1333_v46, 0.0  ;;  %v889_v46 = vld [vmem:[#allocation2 + $0xb8] sm:$0xff] }
 0x200   :  { %v974_v27 = vpop.permute.xlu0 %973  ;;  %v1659_v52 = vpop.permute.xlu1 %1658  ;;  %v1371_v39 = vadd.f32 %v1370_v57, %v1369_v8  ;;  %v1091_v57 = vld [vmem:[#allocation3 + $0xc0] sm:$0xff] }
 0x201   :  { %v1032_v2 = vadd.f32 %v974_v27, %v882_v42  ;;  %v1816_v15 = vadd.low.f32.bf16 %v1083_v59, %v1659_v52  ;;  %v1817_v23 = vadd.high.f32.bf16 %v1084_v32, %v1659_v52 }
 0x202   :  { %v1334_v17 = vld [vmem:[#allocation2 + $0x70] sm:$0xff]  ;;  %v1420_v40 = vld [vmem:[#allocation3 + $0x70] sm:$0xff] }
 0x203   :  { %1058 = vst.msk [vmem:[#allocation2 + $0x80] sm:$0xff] %vm83_vm11, %v1032_v2  ;;  %1308 = vst.msk [vmem:[#allocation3 + $0x80] sm:$0xff] %vm83_vm11, %v1816_v15  ;;  %v1372_v29 = vsel %vm83_vm11, %v1334_v17, 0.0  ;;  %v1458_v31 = vsel %vm83_vm11, %v1420_v40, 0.0  ;;  %v1421_v36 = vld [vmem:[#allocation3 + $0x78] sm:$0xff] }
 0x204   :  { %v976_v25 = vpop.permute.xlu0 %975  ;;  %v978_v50 = vpop.permute.xlu1 %977  ;;  %1309 = vst.msk [vmem:[#allocation3 + $0x88] sm:$0xff] %vm83_vm11, %v1817_v23  ;;  %v1373_v61 = vadd.f32 %v1372_v29, %v1371_v39  ;;  %v1459_v7 = vadd.f32 %v1458_v31, %v1457_v33  ;;  %v1460_v0 = vsel %vm83_vm11, %v1421_v36, 0.0  ;;  %v1090_v23 = vld [vmem:[#allocation3 + $0xb8] sm:$0xff] }
 0x205   :  { %v1033_v43 = vadd.f32 %v976_v25, %v883_v1  ;;  %v1034_v44 = vadd.f32 %v978_v50, %v884_v6 }
 0x206   :  { %v1335_v63 = vld [vmem:[#allocation2 + $0x78] sm:$0xff]  ;;  %v1461_v51 = vadd.f32 %v1460_v0, %v1459_v7 }
 0x207   :  { %1059 = vst.msk [vmem:[#allocation2 + $0x88] sm:$0xff] %vm83_vm11, %v1033_v43  ;;  %1060 = vst.msk [vmem:[#allocation2 + $0x90] sm:$0xff] %vm83_vm11, %v1034_v44  ;;  %v1374_v56 = vsel %vm83_vm11, %v1335_v63, 0.0  ;;  %v890_v44 = vld [vmem:[#allocation2 + $0xc0] sm:$0xff] }
 0x208   :  { %v1664_v16 = vpop.permute.xlu0 %1663  ;;  %v980_v13 = vpop.permute.xlu1 %979  ;;  %v1375_v21 = vadd.f32 %v1374_v56, %v1373_v61 }
 0x209   :  { %v1035_v34 = vadd.f32 %v980_v13, %v885_v10  ;;  %v1818_v60 = vadd.low.f32.bf16 %v1085_v22, %v1664_v16  ;;  %v1819_v5 = vadd.high.f32.bf16 %v1086_v19, %v1664_v16 }
 0x20a   :  { %v1336_v20 = vld [vmem:[#allocation2 + $0x80] sm:$0xff]  ;;  %v1422_v11 = vld [vmem:[#allocation3 + $0x80] sm:$0xff] }
 0x20b   :  { %1061 = vst.msk [vmem:[#allocation2 + $0x98] sm:$0xff] %vm83_vm11, %v1035_v34  ;;  %v1376_v35 = vsel %vm83_vm11, %v1336_v20, 0.0  ;;  %1310 = vst.msk [vmem:[#allocation3 + $0x90] sm:$0xff] %vm83_vm11, %v1818_v60  ;;  %v1462_v42 = vsel %vm83_vm11, %v1422_v11, 0.0  ;;  %v1423_v18 = vld [vmem:[#allocation3 + $0x88] sm:$0xff] }
 0x20c   :  { %v982_v53 = vpop.permute.xlu0 %981  ;;  %v1669_v38 = vpop.permute.xlu1 %1668  ;;  %1311 = vst.msk [vmem:[#allocation3 + $0x98] sm:$0xff] %vm83_vm11, %v1819_v5  ;;  %v1377_v41 = vadd.f32 %v1376_v35, %v1375_v21  ;;  %v1463_v2 = vadd.f32 %v1462_v42, %v1461_v51  ;;  %v1464_v6 = vsel %vm83_vm11, %v1423_v18, 0.0 }
 0x20d   :  { %v1036_v9 = vadd.f32 %v982_v53, %v886_v58  ;;  %v1820_v27 = vadd.low.f32.bf16 %v1087_v37, %v1669_v38  ;;  %v1821_v52 = vadd.high.f32.bf16 %v1088_v4, %v1669_v38 }
 0x20e   :  { %v1337_v55 = vld [vmem:[#allocation2 + $0x88] sm:$0xff]  ;;  %v1338_v26 = vld [vmem:[#allocation2 + $0x90] sm:$0xff]  ;;  %v1465_v40 = vadd.f32 %v1464_v6, %v1463_v2 }
 0x20f   :  { %1062 = vst.msk [vmem:[#allocation2 + $0xa0] sm:$0xff] %vm83_vm11, %v1036_v9  ;;  %v1378_v59 = vsel %vm83_vm11, %v1337_v55, 0.0  ;;  %1312 = vst.msk [vmem:[#allocation3 + $0xa0] sm:$0xff] %vm83_vm11, %v1820_v27  ;;  %v1380_v49 = vsel %vm83_vm11, %v1338_v26, 0.0 }
 0x210   :  { %v984_v32 = vpop.permute.xlu0 %983  ;;  %v986_v48 = vpop.permute.xlu1 %985  ;;  %v1379_v45 = vadd.f32 %v1378_v59, %v1377_v41  ;;  %1313 = vst.msk [vmem:[#allocation3 + $0xa8] sm:$0xff] %vm83_vm11, %v1821_v52 }
 0x211   :  { %v1037_v1 = vadd.f32 %v984_v32, %v887_v28  ;;  %v1038_v47 = vadd.f32 %v986_v48, %v888_v12 }
 0x212   :  { %v1339_v54 = vld [vmem:[#allocation2 + $0x98] sm:$0xff]  ;;  %v1381_v25 = vadd.f32 %v1380_v49, %v1379_v45 }
 0x213   :  { %1063 = vst.msk [vmem:[#allocation2 + $0xa8] sm:$0xff] %vm83_vm11, %v1037_v1  ;;  %1064 = vst.msk [vmem:[#allocation2 + $0xb0] sm:$0xff] %vm83_vm11, %v1038_v47  ;;  %v1382_v50 = vsel %vm83_vm11, %v1339_v54, 0.0  ;;  %v1424_v17 = vld [vmem:[#allocation3 + $0x90] sm:$0xff]  ;;  %v1425_v24 = vld [vmem:[#allocation3 + $0x98] sm:$0xff] }
 0x214   :  { %v1674_v15 = vpop.permute.xlu0 %1673  ;;  %v988_v14 = vpop.permute.xlu1 %987  ;;  %v1466_v43 = vsel %vm83_vm11, %v1424_v17, 0.0  ;;  %v1468_v31 = vsel %vm83_vm11, %v1425_v24, 0.0  ;;  %v1383_v19 = vadd.f32 %v1382_v50, %v1381_v25 }
 0x215   :  { %v1039_v30 = vadd.f32 %v988_v14, %v889_v46  ;;  %v1467_v10 = vadd.f32 %v1466_v43, %v1465_v40  ;;  %v1822_v63 = vadd.low.f32.bf16 %v1089_v3, %v1674_v15  ;;  %v1823_v8 = vadd.high.f32.bf16 %v1090_v23, %v1674_v15 }
 0x216   :  { %v1340_v62 = vld [vmem:[#allocation2 + $0xa0] sm:$0xff]  ;;  %v1426_v13 = vld [vmem:[#allocation3 + $0xa0] sm:$0xff] }
 0x217   :  { %1065 = vst.msk [vmem:[#allocation2 + $0xb8] sm:$0xff] %vm83_vm11, %v1039_v30  ;;  %v1384_v29 = vsel %vm83_vm11, %v1340_v62, 0.0  ;;  %v1469_v39 = vadd.f32 %v1468_v31, %v1467_v10  ;;  %1314 = vst.msk [vmem:[#allocation3 + $0xb0] sm:$0xff] %vm83_vm11, %v1822_v63  ;;  %v1470_v34 = vsel %vm83_vm11, %v1426_v13, 0.0  ;;  %v1427_v61 = vld [vmem:[#allocation3 + $0xa8] sm:$0xff] }
 0x218   :  { %v990_v16 = vpop.permute.xlu0 %989  ;;  %v1241_v22 = vpop.permute.xlu1 %1240  ;;  %1315 = vst.msk [vmem:[#allocation3 + $0xb8] sm:$0xff] %vm83_vm11, %v1823_v8  ;;  %v1385_v20 = vadd.f32 %v1384_v29, %v1383_v19  ;;  %v1472_v0 = vsel %vm83_vm11, %v1427_v61, 0.0 }
 0x219   :  { %v1040_v36 = vadd.f32 %v990_v16, %v890_v44  ;;  %v1291_v33 = vadd.f32 %v1241_v22, %v1091_v57  ;;  %v1471_v5 = vadd.f32 %v1470_v34, %v1469_v39 }
 0x21a   :  { %v1341_v56 = vld [vmem:[#allocation2 + $0xa8] sm:$0xff]  ;;  %v1342_v58 = vld [vmem:[#allocation2 + $0xb0] sm:$0xff] }
 0x21b   :  { %1066 = vst.msk [vmem:[#allocation2 + $0xc0] sm:$0xff] %vm83_vm11, %v1040_v36  ;;  %1316 = vst.msk [vmem:[#allocation3 + $0xc0] sm:$0xff] %vm83_vm11, %v1291_v33  ;;  %v1386_v7 = vsel %vm83_vm11, %v1341_v56, 0.0  ;;  %v1388_v35 = vsel %vm83_vm11, %v1342_v58, 0.0  ;;  %v1473_v11 = vadd.f32 %v1472_v0, %v1471_v5 }
 0x21c   :  { %v1387_v60 = vadd.f32 %v1386_v7, %v1385_v20 }
 0x21e   :  { %v1343_v53 = vld [vmem:[#allocation2 + $0xb8] sm:$0xff]  ;;  %v1389_v38 = vadd.f32 %v1388_v35, %v1387_v60 }
 0x21f   :  { %v1390_v37 = vsel %vm83_vm11, %v1343_v53, 0.0  ;;  %v1428_v4 = vld [vmem:[#allocation3 + $0xb0] sm:$0xff]  ;;  %v1429_v21 = vld [vmem:[#allocation3 + $0xb8] sm:$0xff] }
 0x220   :  { %v1474_v9 = vsel %vm83_vm11, %v1428_v4, 0.0  ;;  %v1391_v42 = vadd.f32 %v1390_v37, %v1389_v38  ;;  %v1476_v18 = vsel %vm83_vm11, %v1429_v21, 0.0 }
 0x221   :  { %v1475_v55 = vadd.f32 %v1474_v9, %v1473_v11 }
 0x222   :  { %v1344_v28 = vld [vmem:[#allocation2 + $0xc0] sm:$0xff]  ;;  %v1430_v12 = vld [vmem:[#allocation3 + $0xc0] sm:$0xff] }
 0x223   :  { %v1392_v41 = vsel %vm83_vm11, %v1344_v28, 0.0  ;;  %v1478_v51 = vsel %vm83_vm11, %v1430_v12, 0.0  ;;  %v1477_v52 = vadd.f32 %v1476_v18, %v1475_v55  ;;  %vm1404_vm11 = vcmask 0  }
 0x224   :  { %v1393_v27 = vadd.f32 %v1392_v41, %v1391_v42 }
 0x225   :  { %v1479_v59 = vadd.f32 %v1478_v51, %v1477_v52 }
 0x226   :  { %1394 = vadd.xlane.f32.xlu0 %v1393_v27 }
 0x227   :  { %1480 = vadd.xlane.f32.xlu1 %v1479_v59 }
 0x2af   :  { %v1395_v32 = vpop.xlane.xlu0 %1394 }
 0x2b0   :  { %v1396_v48 = vrot.slane %v1395_v32, 4  ;;  %v1481_v26 = vpop.xlane.xlu1 %1480 }
 0x2b1   :  { %v1482_v2 = vrot.slane %v1481_v26, 4 }
 0x2b2   :  { %v1397_v45 = vadd.f32 %v1396_v48, %v1395_v32 }
 0x2b3   :  { %v1483_v47 = vadd.f32 %v1482_v2, %v1481_v26 }
 0x2b4   :  { %v1398_v1 = vrot.slane %v1397_v45, 2 }
 0x2b5   :  { %v1484_v6 = vrot.slane %v1483_v47, 2 }
 0x2b6   :  { %v1399_v46 = vadd.f32 %v1398_v1, %v1397_v45 }
 0x2b7   :  { %v1485_v54 = vadd.f32 %v1484_v6, %v1483_v47 }
 0x2b8   :  { %v1400_v3 = vrot.slane %v1399_v46, 1 }
 0x2b9   :  { %v1486_v15 = vrot.slane %v1485_v54, 1 }
 0x2ba   :  { %v1401_v49 = vadd.f32 %v1400_v3, %v1399_v46 }
 0x2bb   :  { %v1487_v23 = vadd.f32 %v1486_v15, %v1485_v54 }
 0x2bc   :  { %1606 = vpush %v1401_v49 }
 0x2bd   :  { %1608 = vpush %v1487_v23 }
 0x2ed   :  { %s1607_s23 = spop %1606 }
 0x2ee   :  { %v1403_v14 = vstv %s1607_s23  ;;  %s1609_s24 = spop %1608 }
 0x2ef   :  { %1405 = vst.msk [vmem:[#allocation4] sm:$0x1] %vm1404_vm11, %v1403_v14  ;;  %v1489_v25 = vstv %s1609_s24 }
 0x2f0   :  { %1835 = shalt.err (!%p1832_p4)
}
 0x2f1   :  { %1500 = dma.vmem_to_hbm [thread:$0]  %s1498_s29, 16, %s2757_s2, [#allocation5]   ;;  %1490 = vst.msk [vmem:[#allocation6] sm:$0x1] %vm1404_vm11, %v1489_v25 }
 0x2f2   :  { %s1844_s30 = scalar_lea.vmem %s1508_s22, 16  ;;  %s1848_s4 = scalar_lea.vmem %s1508_s22, 32 }
 0x2f3   :  { %p1845_p5 = scmp.ne.s32.totalorder %s1508_s22, %s1844_s30  ;;  %p1849_p6 = scmp.lt.s32.totalorder %s1508_s22, %s1508_s22 }
 0x2f4   :  { %p1850_p7 = scmp.lt.s32.totalorder %s1848_s4, %s1844_s30 }
 0x2f6   :  { %p1851_p8 = por %p1850_p7, %p1849_p6 }
 0x2f8   :  { %p1852_p9 = pnand %p1851_p8, %p1845_p5 }
 0x2fa   :  { %1855 = shalt.err (!%p1852_p9)
}
 0x2fb   :  { %1510 = dma.vmem_to_hbm [thread:$0]  %s1508_s22, 16, %s2758_s3, [#allocation7]  }
 0x2fc   :  { %1864 = dma.done.wait [#allocation5], 16  }
 0x2fd   :  { %1865 = vsyncadd [#allocation5], 4294967280 }
 0x2fe   :  { %1866 = dma.done.wait [#allocation7], 16  }
 0x2ff   :  { %1867 = vsyncadd [#allocation7], 4294967280 }
 0x300   :  { %1517 = vsyncpa [#allocation5], 1 }
 0x301   :  { %1518 = vsyncpa [#allocation7], 1 }

</bundles_post_ra>
